<compile_context>
chip_gen: v5e
topology: v5e:2x2
jax: 0.10.0
libtpu: 0.0.40
codegen_flags: <defaults>
</compile_context>

<pallas_src>
import random

import jax
import jax.numpy as jnp
from jax import lax
from jax.experimental import pallas as pl
from jax.experimental.pallas import tpu as pltpu


B_PAD = 8      # f32 sublane minimum
LANE = 128     # lane width


def _round_up(x, m):
    return (x + m - 1) // m * m


# ------------------------------ Pallas kernel --------------------------------

def _seq2seq_kernel(tf_ref,        # SMEM (T_trg,) int32    teacher-forcing mask (scalar prefetch)
                    src_ref,       # (T_src, B, 1) int32    source tokens
                    trg_ref,       # (T_trg, B, 1) int32    target tokens
                    enc_w_ref,     # (SRC_Vp + H, 4H) bf16  stacked [enc_emb@W_ih ; W_hh]
                    enc_b_ref,     # (1, 4H) f32            b_ih + b_hh
                    dec_w_ref,     # (TRG_Vp + H, 4H) bf16  stacked [dec_emb@W_ih ; W_hh]
                    dec_b_ref,     # (1, 4H) f32
                    wfc_ref,       # (H, TRG_Vp) bf16
                    bfc_ref,       # (1, TRG_Vp) f32        pad columns = -1e30
                    out_ref):      # (T_trg, B, TRG_Vp) f32
    T_src = src_ref.shape[0]
    T_trg, B, Vp = out_ref.shape
    H = enc_b_ref.shape[1] // 4
    SRC_Vp = enc_w_ref.shape[0] - H

    # Hoisted out of the sequential loops (JAX does not CSE broadcasts in loops).
    enc_w = enc_w_ref[...]
    dec_w = dec_w_ref[...]
    wfc = wfc_ref[...]
    enc_b = jnp.broadcast_to(enc_b_ref[...], (B, 4 * H))
    dec_b = jnp.broadcast_to(dec_b_ref[...], (B, 4 * H))
    bfc = jnp.broadcast_to(bfc_ref[...], (B, Vp))
    src_lane = lax.broadcasted_iota(jnp.int32, (B, SRC_Vp), 1)
    trg_lane = lax.broadcasted_iota(jnp.int32, (B, Vp), 1)

    def lstm_step(lhs_bf16, w, b, c):
        # One (B, V+H) x (V+H, 4H) MXU pass yields all four gates.
        gates = jnp.dot(lhs_bf16, w, preferred_element_type=jnp.float32) + b
        # Full-width EUP passes, slice afterwards.  PyTorch gate order i,f,g,o.
        sig = jax.nn.sigmoid(gates)
        th = jnp.tanh(gates)
        c_new = sig[:, H:2 * H] * c + sig[:, 0:H] * th[:, 2 * H:3 * H]
        h_new = sig[:, 3 * H:4 * H] * jnp.tanh(c_new)
        return h_new, c_new

    # ---------------------------- encoder ----------------------------
    def enc_step(t, carry):
        h, c = carry
        oh = (src_lane == src_ref[t]).astype(jnp.bfloat16)            # one-hot(src_t)
        lhs = jnp.concatenate([oh, h.astype(jnp.bfloat16)], axis=1)   # (B, SRC_Vp+H)
        return lstm_step(lhs, enc_w, enc_b, c)

    h0 = jnp.zeros((B, H), jnp.float32)
    c0 = jnp.zeros((B, H), jnp.float32)
    h, c = lax.fori_loop(0, T_src, enc_step, (h0, c0), unroll=True)

    # ---------------------------- decoder ----------------------------
    out_ref[0] = jnp.zeros((B, Vp), jnp.float32)        # result[0] stays zero
    inp_oh0 = (trg_lane == trg_ref[0]).astype(jnp.bfloat16)

    def dec_step(i, carry):
        h, c, inp_oh = carry
        lhs = jnp.concatenate([inp_oh, h.astype(jnp.bfloat16)], axis=1)
        h_new, c_new = lstm_step(lhs, dec_w, dec_b, c)

        logits = jnp.dot(h_new.astype(jnp.bfloat16), wfc,
                         preferred_element_type=jnp.float32) + bfc
        out_ref[i] = logits                             # lane-dense (B, 128) store

        # Greedy next token = first-max argmax expressed as a one-hot row
        # (padded columns carry -1e30 logits so they never win).
        m = jnp.max(logits, axis=-1, keepdims=True)
        tok = jnp.min(jnp.where(logits == m, trg_lane, Vp), axis=-1,
                      keepdims=True)                    # (B, 1) int32
        greedy_oh = (trg_lane == tok).astype(jnp.bfloat16)
        trg_oh = (trg_lane == trg_ref[i]).astype(jnp.bfloat16)
        # Teacher forcing: single select on the SMEM scalar decision.
        next_oh = jnp.where(tf_ref[i] == 1, trg_oh, greedy_oh)
        return h_new, c_new, next_oh

    lax.fori_loop(1, T_trg, dec_step, (h, c, inp_oh0), unroll=True)


# ------------------------------- JAX wrappers --------------------------------

def _seq2seq_pallas(tf_mask, src_p, trg_p, params):
    T_src, B, _ = src_p.shape
    T_trg = trg_p.shape[0]
    Vp = params["dec_wfc"].shape[1]
    grid_spec = pltpu.PrefetchScalarGridSpec(
        num_scalar_prefetch=1,            # tf_mask -> SMEM
        grid=(1,),
        in_specs=[
            pl.BlockSpec(src_p.shape, lambda i, tf: (0, 0, 0)),
            pl.BlockSpec(trg_p.shape, lambda i, tf: (0, 0, 0)),
            pl.BlockSpec(params["enc_w"].shape, lambda i, tf: (0, 0)),
            pl.BlockSpec(params["enc_b"].shape, lambda i, tf: (0, 0)),
            pl.BlockSpec(params["dec_w"].shape, lambda i, tf: (0, 0)),
            pl.BlockSpec(params["dec_b"].shape, lambda i, tf: (0, 0)),
            pl.BlockSpec(params["dec_wfc"].shape, lambda i, tf: (0, 0)),
            pl.BlockSpec(params["dec_bfc"].shape, lambda i, tf: (0, 0)),
        ],
        out_specs=pl.BlockSpec((T_trg, B, Vp), lambda i, tf: (0, 0, 0)),
    )
    return pl.pallas_call(
        _seq2seq_kernel,
        out_shape=jax.ShapeDtypeStruct((T_trg, B, Vp), jnp.float32),
        grid_spec=grid_spec,
        compiler_params=pltpu.CompilerParams(
            dimension_semantics=("arbitrary",)),
    )(tf_mask, src_p, trg_p,
      params["enc_w"], params["enc_b"],
      params["dec_w"], params["dec_b"],
      params["dec_wfc"], params["dec_bfc"])


@jax.jit
def _seq2seq_core(params, src, trg, tf_mask):
    B = src.shape[1]
    pad = B_PAD - B
    src_p = jnp.pad(src, ((0, 0), (0, pad)))[:, :, None]   # (T_src, 8, 1) int32
    trg_p = jnp.pad(trg, ((0, 0), (0, pad)))[:, :, None]   # (T_trg, 8, 1) int32
    return _seq2seq_pallas(tf_mask, src_p, trg_p, params)


def seq2seq_forward(params, src, trg, teacher_forcing_ratio, trg_vocab):
    """Mirrors Seq2Seq.forward: result[0] stays zero, steps 1..T-1 decoded.
    random.random() runs on the host (same call count / semantics as the
    PyTorch module); the decisions go into the kernel as an int32 SMEM mask."""
    seq_len, batch = trg.shape
    assert batch <= B_PAD
    decisions = [0]                                   # index 0 unused
    for _ in range(1, seq_len):
        decisions.append(1 if random.random() < teacher_forcing_ratio else 0)
    tf_mask = jnp.asarray(decisions, dtype=jnp.int32)
    out_p = _seq2seq_core(params, src, trg, tf_mask)
    return out_p[:, :batch, :trg_vocab]               # (T, B, V)


# --------------------------- parameter preparation ---------------------------

def prepare_params(raw, src_v_pad, trg_v_pad):
    """Fuse embeddings with the input->gate projections, stack them with the
    recurrent weights (one MXU pass per step), pad vocab to lane width, and
    cast MXU operands to bf16 (f32 accumulation in-kernel)."""
    bf16 = jnp.bfloat16
    H4 = raw["enc_whh_t"].shape[1]
    src_V = raw["enc_emb"].shape[0]
    trg_V = raw["dec_emb"].shape[0]
    H = raw["dec_wfc_t"].shape[0]

    enc_emb_wih = jnp.zeros((src_v_pad, H4), jnp.float32).at[:src_V].set(
        raw["enc_emb"] @ raw["enc_wih_t"])
    enc_w = jnp.concatenate([enc_emb_wih, raw["enc_whh_t"]], axis=0)

    dec_emb_wih = jnp.zeros((trg_v_pad, H4), jnp.float32).at[:trg_V].set(
        raw["dec_emb"] @ raw["dec_wih_t"])
    dec_w = jnp.concatenate([dec_emb_wih, raw["dec_whh_t"]], axis=0)

    dec_wfc = jnp.zeros((H, trg_v_pad), jnp.float32).at[:, :trg_V].set(raw["dec_wfc_t"])
    dec_bfc = jnp.full((1, trg_v_pad), -1e30, jnp.float32).at[:, :trg_V].set(raw["dec_bfc"])

    return {
        "enc_w":   enc_w.astype(bf16),      # (SRC_Vp + H, 4H)
        "enc_b":   raw["enc_b"],            # f32
        "dec_w":   dec_w.astype(bf16),      # (TRG_Vp + H, 4H)
        "dec_b":   raw["dec_b"],            # f32
        "dec_wfc": dec_wfc.astype(bf16),    # (H, TRG_Vp)
        "dec_bfc": dec_bfc,                 # f32, pad cols -1e30
    }


# ------------------------------ JAX references --------------------------------

def _reference_f32(raw, src, trg, tf_mask):
    """Pure f32 reference with the raw (unfused) weights."""
    def cell(x, h, c, wih, whh, b):
        g = x @ wih + h @ whh + b
        H = h.shape[1]
        i = jax.nn.sigmoid(g[:, 0 * H:1 * H])
        f = jax.nn.sigmoid(g[:, 1 * H:2 * H])
        gg = jnp.tanh(g[:, 2 * H:3 * H])
        o = jax.nn.sigmoid(g[:, 3 * H:4 * H])
        c = f * c + i * gg
        return o * jnp.tanh(c), c

    Ts, B = src.shape
    T = trg.shape[0]
    H = raw["enc_whh_t"].shape[0]
    V = raw["dec_wfc_t"].shape[1]
    h = jnp.zeros((B, H), jnp.float32)
    c = jnp.zeros((B, H), jnp.float32)
    for t in range(Ts):
        h, c = cell(raw["enc_emb"][src[t]], h, c,
                    raw["enc_wih_t"], raw["enc_whh_t"], raw["enc_b"])
    res = [jnp.zeros((B, V), jnp.float32)]
    inp = trg[0]
    for i in range(1, T):
        h, c = cell(raw["dec_emb"][inp], h, c,
                    raw["dec_wih_t"], raw["dec_whh_t"], raw["dec_b"])
        logits = h @ raw["dec_wfc_t"] + raw["dec_bfc"]
        res.append(logits)
        greedy = jnp.argmax(logits, axis=1).astype(trg.dtype)
        inp = jnp.where(tf_mask[i] == 1, trg[i], greedy)
    return jnp.stack(res, 0)


def _reference_bf16(raw, src, trg, tf_mask):
    """bf16-matmul-matched reference (same weight precision as the kernel) so
    the greedy-feedback path can be validated tightly."""
    bf = jnp.bfloat16
    enc_emb_wih = (raw["enc_emb"] @ raw["enc_wih_t"]).astype(bf)
    enc_whh = raw["enc_whh_t"].astype(bf)
    dec_emb_wih = (raw["dec_emb"] @ raw["dec_wih_t"]).astype(bf)
    dec_whh = raw["dec_whh_t"].astype(bf)
    wfc = raw["dec_wfc_t"].astype(bf)

    def cell(xg, h, c, whh, b):
        g = xg + jnp.dot(h.astype(bf), whh,
                         preferred_element_type=jnp.float32) + b
        H = h.shape[1]
        i = jax.nn.sigmoid(g[:, 0 * H:1 * H])
        f = jax.nn.sigmoid(g[:, 1 * H:2 * H])
        gg = jnp.tanh(g[:, 2 * H:3 * H])
        o = jax.nn.sigmoid(g[:, 3 * H:4 * H])
        c = f * c + i * gg
        return o * jnp.tanh(c), c

    Ts, B = src.shape
    T = trg.shape[0]
    H = raw["enc_whh_t"].shape[0]
    V = raw["dec_wfc_t"].shape[1]
    h = jnp.zeros((B, H), jnp.float32)
    c = jnp.zeros((B, H), jnp.float32)
    for t in range(Ts):
        h, c = cell(enc_emb_wih[src[t]].astype(jnp.float32), h, c,
                    enc_whh, raw["enc_b"])
    res = [jnp.zeros((B, V), jnp.float32)]
    inp = trg[0]
    for i in range(1, T):
        h, c = cell(dec_emb_wih[inp].astype(jnp.float32), h, c,
                    dec_whh, raw["dec_b"])
        logits = jnp.dot(h.astype(bf), wfc,
                         preferred_element_type=jnp.float32) + raw["dec_bfc"]
        res.append(logits)
        greedy = jnp.argmax(logits, axis=1).astype(trg.dtype)
        inp = jnp.where(tf_mask[i] == 1, trg[i], greedy)
    return jnp.stack(res, 0)


# ---------------------------------- main --------------------------------------

if __name__ == "__main__":
    random.seed(0)

    SRC_LEN, TRG_LEN, B = 7, 8, 4
    SRC_VOCAB, TRG_VOCAB = 50, 64
    EMB, HID = 32, 32
    SRC_V_PAD = max(LANE, _round_up(SRC_VOCAB, LANE))
    TRG_V_PAD = max(LANE, _round_up(TRG_VOCAB, LANE))

    key = jax.random.PRNGKey(0)
    ks = jax.random.split(key, 12)

    def init(k, shape, scale=0.1):
        return (scale * jax.random.normal(k, shape)).astype(jnp.float32)

    raw = {
        # encoder: Embedding(SRC_VOCAB, EMB) + LSTM(EMB, HID)
        "enc_emb":   init(ks[0], (SRC_VOCAB, EMB)),
        "enc_wih_t": init(ks[1], (EMB, 4 * HID)),
        "enc_whh_t": init(ks[2], (HID, 4 * HID)),
        "enc_b":     init(ks[3], (1, 4 * HID)),           # b_ih + b_hh combined
        # decoder: Embedding(TRG_VOCAB, EMB) + LSTM(EMB, HID) + Linear(HID, TRG_VOCAB)
        "dec_emb":   init(ks[4], (TRG_VOCAB, EMB)),
        "dec_wih_t": init(ks[5], (EMB, 4 * HID)),
        "dec_whh_t": init(ks[6], (HID, 4 * HID)),
        "dec_b":     init(ks[7], (1, 4 * HID)),
        "dec_wfc_t": init(ks[8], (HID, TRG_VOCAB)),
        "dec_bfc":   init(ks[9], (1, TRG_VOCAB)),
    }
    params = prepare_params(raw, SRC_V_PAD, TRG_V_PAD)

    src = jax.random.randint(ks[10], (SRC_LEN, B), 0, SRC_VOCAB, dtype=jnp.int32)
    trg = jax.random.randint(ks[11], (TRG_LEN, B), 0, TRG_VOCAB, dtype=jnp.int32)

    # Check 1: teacher forcing always on vs. pure-f32 reference (bf16-vs-f32
    # rounding is the only difference).
    out_tf = seq2seq_forward(params, src, trg, teacher_forcing_ratio=1.0,
                             trg_vocab=TRG_VOCAB)
    ref_tf = _reference_f32(raw, src, trg, jnp.ones((TRG_LEN,), jnp.int32))
    err_tf = float(jnp.max(jnp.abs(out_tf - ref_tf)))
    assert err_tf < 5e-2, f"teacher-forced mismatch: max abs err {err_tf}"

    # Check 2: pure greedy feedback (teacher forcing off) vs. a bf16-matched
    # reference, validating the in-kernel argmax + token-feedback path.
    out_gr = seq2seq_forward(params, src, trg, teacher_forcing_ratio=0.0,
                             trg_vocab=TRG_VOCAB)
    ref_gr = _reference_bf16(raw, src, trg, jnp.zeros((TRG_LEN,), jnp.int32))
    err_gr = float(jnp.max(jnp.abs(out_gr - ref_gr)))
    assert err_gr < 1e-2, f"greedy-path mismatch: max abs err {err_gr}"

    # Mixed teacher forcing (the normal use case).
    out = seq2seq_forward(params, src, trg, teacher_forcing_ratio=0.5,
                          trg_vocab=TRG_VOCAB)
    out = jax.block_until_ready(out)

    assert out.shape == (TRG_LEN, B, TRG_VOCAB)
    assert bool(jnp.all(out[0] == 0.0))   # row 0 untouched, same as torch.zeros init
    print("KERNEL_OK")
</pallas_src>

<mosaic_0001>
module attributes {stable_mosaic.version = 11 : i64} {
  func.func @_seq2seq_kernel(%arg0: i32, %arg1: memref<8xi32, #tpu.memory_space<smem>>, %arg2: memref<7x8x1xi32, #tpu.memory_space<vmem>>, %arg3: memref<8x8x1xi32, #tpu.memory_space<vmem>>, %arg4: memref<160x128xbf16, #tpu.memory_space<vmem>>, %arg5: memref<1x128xf32, #tpu.memory_space<vmem>>, %arg6: memref<160x128xbf16, #tpu.memory_space<vmem>>, %arg7: memref<1x128xf32, #tpu.memory_space<vmem>>, %arg8: memref<32x128xbf16, #tpu.memory_space<vmem>>, %arg9: memref<1x128xf32, #tpu.memory_space<vmem>>, %arg10: memref<8x8x128xf32, #tpu.memory_space<vmem>>) attributes {dimension_semantics = [#tpu.dimension_semantics<arbitrary>], iteration_bounds = array<i64: 1>, scalar_prefetch = 1 : i64, scratch_operands = 0 : i64, tpu.core_type = #tpu.core_type<tc>, window_params = [{pipeline_mode = #tpu.pipeline_mode<synchronous>, transform_indices = @transform_0, window_bounds = array<i64: 7, 8, 1>}, {pipeline_mode = #tpu.pipeline_mode<synchronous>, transform_indices = @transform_1, window_bounds = array<i64: 8, 8, 1>}, {pipeline_mode = #tpu.pipeline_mode<synchronous>, transform_indices = @transform_2, window_bounds = array<i64: 160, 128>}, {pipeline_mode = #tpu.pipeline_mode<synchronous>, transform_indices = @transform_3, window_bounds = array<i64: 1, 128>}, {pipeline_mode = #tpu.pipeline_mode<synchronous>, transform_indices = @transform_4, window_bounds = array<i64: 160, 128>}, {pipeline_mode = #tpu.pipeline_mode<synchronous>, transform_indices = @transform_5, window_bounds = array<i64: 1, 128>}, {pipeline_mode = #tpu.pipeline_mode<synchronous>, transform_indices = @transform_6, window_bounds = array<i64: 32, 128>}, {pipeline_mode = #tpu.pipeline_mode<synchronous>, transform_indices = @transform_7, window_bounds = array<i64: 1, 128>}, {pipeline_mode = #tpu.pipeline_mode<synchronous>, transform_indices = @transform_8, window_bounds = array<i64: 8, 8, 128>}]} {
    %c0 = arith.constant 0 : index
    %c0_0 = arith.constant 0 : index
    %0 = vector.load %arg4[%c0, %c0_0] : memref<160x128xbf16, #tpu.memory_space<vmem>>, vector<160x128xbf16>
    %c0_1 = arith.constant 0 : index
    %c0_2 = arith.constant 0 : index
    %1 = vector.load %arg6[%c0_1, %c0_2] : memref<160x128xbf16, #tpu.memory_space<vmem>>, vector<160x128xbf16>
    %c0_3 = arith.constant 0 : index
    %c0_4 = arith.constant 0 : index
    %2 = vector.load %arg8[%c0_3, %c0_4] : memref<32x128xbf16, #tpu.memory_space<vmem>>, vector<32x128xbf16>
    %c0_5 = arith.constant 0 : index
    %c0_6 = arith.constant 0 : index
    %3 = vector.load %arg5[%c0_5, %c0_6] : memref<1x128xf32, #tpu.memory_space<vmem>>, vector<1x128xf32>
    %4 = vector.shape_cast %3 : vector<1x128xf32> to vector<1x128xf32>
    %5 = vector.broadcast %4 : vector<1x128xf32> to vector<8x128xf32>
    %c0_7 = arith.constant 0 : index
    %c0_8 = arith.constant 0 : index
    %6 = vector.load %arg7[%c0_7, %c0_8] : memref<1x128xf32, #tpu.memory_space<vmem>>, vector<1x128xf32>
    %7 = vector.shape_cast %6 : vector<1x128xf32> to vector<1x128xf32>
    %8 = vector.broadcast %7 : vector<1x128xf32> to vector<8x128xf32>
    %c0_9 = arith.constant 0 : index
    %c0_10 = arith.constant 0 : index
    %9 = vector.load %arg9[%c0_9, %c0_10] : memref<1x128xf32, #tpu.memory_space<vmem>>, vector<1x128xf32>
    %10 = vector.shape_cast %9 : vector<1x128xf32> to vector<1x128xf32>
    %11 = vector.broadcast %10 : vector<1x128xf32> to vector<8x128xf32>
    %12 = tpu.iota {dimensions = array<i32: 1>} : vector<8x128xi32>
    %13 = tpu.iota {dimensions = array<i32: 1>} : vector<8x128xi32>
    %cst = arith.constant 0.000000e+00 : f32
    %14 = vector.broadcast %cst : f32 to vector<8x32xf32>
    %cst_11 = arith.constant 0.000000e+00 : f32
    %15 = vector.broadcast %cst_11 : f32 to vector<8x32xf32>
    %c0_i32 = arith.constant 0 : i32
    %16 = arith.index_cast %c0_i32 : i32 to index
    %c0_12 = arith.constant 0 : index
    %c0_13 = arith.constant 0 : index
    %17 = vector.load %arg2[%16, %c0_12, %c0_13] : memref<7x8x1xi32, #tpu.memory_space<vmem>>, vector<1x8x1xi32>
    %18 = vector.shape_cast %17 : vector<1x8x1xi32> to vector<8x1xi32>
    %19 = vector.broadcast %18 : vector<8x1xi32> to vector<8x128xi32>
    %20 = arith.cmpi eq, %12, %19 : vector<8x128xi32>
    %21 = arith.extui %20 : vector<8x128xi1> to vector<8x128xi32>
    %22 = arith.sitofp %21 : vector<8x128xi32> to vector<8x128xf32>
    %23 = arith.truncf %22 : vector<8x128xf32> to vector<8x128xbf16>
    %24 = arith.truncf %14 : vector<8x32xf32> to vector<8x32xbf16>
    %25 = tpu.concatenate %23, %24 in 1 : vector<8x128xbf16>, vector<8x32xbf16> -> vector<8x160xbf16>
    %cst_14 = arith.constant dense<0.000000e+00> : vector<8x128xf32>
    %26 = tpu.matmul %25, %0, %cst_14 {dimension_numbers = #tpu.dot_dimension_numbers<[1], [0], [0], [1], [0, 0, 1, 1], [], []>} : vector<8x160xbf16>, vector<160x128xbf16>, vector<8x128xf32> -> vector<8x128xf32>
    %27 = arith.addf %26, %5 : vector<8x128xf32>
    %28 = arith.negf %27 : vector<8x128xf32>
    %29 = math.exp %28 : vector<8x128xf32>
    %cst_15 = arith.constant 1.000000e+00 : f32
    %30 = vector.broadcast %cst_15 : f32 to vector<8x128xf32>
    %31 = arith.addf %30, %29 : vector<8x128xf32>
    %32 = arith.divf %30, %31 : vector<8x128xf32>
    %33 = math.tanh %27 : vector<8x128xf32>
    %34 = vector.extract_strided_slice %32 {offsets = [0, 32], sizes = [8, 32], strides = [1, 1]} : vector<8x128xf32> to vector<8x32xf32>
    %35 = arith.mulf %34, %15 : vector<8x32xf32>
    %36 = vector.extract_strided_slice %32 {offsets = [0, 0], sizes = [8, 32], strides = [1, 1]} : vector<8x128xf32> to vector<8x32xf32>
    %37 = vector.extract_strided_slice %33 {offsets = [0, 64], sizes = [8, 32], strides = [1, 1]} : vector<8x128xf32> to vector<8x32xf32>
    %38 = arith.mulf %36, %37 : vector<8x32xf32>
    %39 = arith.addf %35, %38 : vector<8x32xf32>
    %40 = vector.extract_strided_slice %32 {offsets = [0, 96], sizes = [8, 32], strides = [1, 1]} : vector<8x128xf32> to vector<8x32xf32>
    %41 = math.tanh %39 : vector<8x32xf32>
    %42 = arith.mulf %40, %41 : vector<8x32xf32>
    %c1_i32 = arith.constant 1 : i32
    %43 = arith.index_cast %c1_i32 : i32 to index
    %c0_16 = arith.constant 0 : index
    %c0_17 = arith.constant 0 : index
    %44 = vector.load %arg2[%43, %c0_16, %c0_17] : memref<7x8x1xi32, #tpu.memory_space<vmem>>, vector<1x8x1xi32>
    %45 = vector.shape_cast %44 : vector<1x8x1xi32> to vector<8x1xi32>
    %46 = vector.broadcast %45 : vector<8x1xi32> to vector<8x128xi32>
    %47 = arith.cmpi eq, %12, %46 : vector<8x128xi32>
    %48 = arith.extui %47 : vector<8x128xi1> to vector<8x128xi32>
    %49 = arith.sitofp %48 : vector<8x128xi32> to vector<8x128xf32>
    %50 = arith.truncf %49 : vector<8x128xf32> to vector<8x128xbf16>
    %51 = arith.truncf %42 : vector<8x32xf32> to vector<8x32xbf16>
    %52 = tpu.concatenate %50, %51 in 1 : vector<8x128xbf16>, vector<8x32xbf16> -> vector<8x160xbf16>
    %cst_18 = arith.constant dense<0.000000e+00> : vector<8x128xf32>
    %53 = tpu.matmul %52, %0, %cst_18 {dimension_numbers = #tpu.dot_dimension_numbers<[1], [0], [0], [1], [0, 0, 1, 1], [], []>} : vector<8x160xbf16>, vector<160x128xbf16>, vector<8x128xf32> -> vector<8x128xf32>
    %54 = arith.addf %53, %5 : vector<8x128xf32>
    %55 = arith.negf %54 : vector<8x128xf32>
    %56 = math.exp %55 : vector<8x128xf32>
    %cst_19 = arith.constant 1.000000e+00 : f32
    %57 = vector.broadcast %cst_19 : f32 to vector<8x128xf32>
    %58 = arith.addf %57, %56 : vector<8x128xf32>
    %59 = arith.divf %57, %58 : vector<8x128xf32>
    %60 = math.tanh %54 : vector<8x128xf32>
    %61 = vector.extract_strided_slice %59 {offsets = [0, 32], sizes = [8, 32], strides = [1, 1]} : vector<8x128xf32> to vector<8x32xf32>
    %62 = arith.mulf %61, %39 : vector<8x32xf32>
    %63 = vector.extract_strided_slice %59 {offsets = [0, 0], sizes = [8, 32], strides = [1, 1]} : vector<8x128xf32> to vector<8x32xf32>
    %64 = vector.extract_strided_slice %60 {offsets = [0, 64], sizes = [8, 32], strides = [1, 1]} : vector<8x128xf32> to vector<8x32xf32>
    %65 = arith.mulf %63, %64 : vector<8x32xf32>
    %66 = arith.addf %62, %65 : vector<8x32xf32>
    %67 = vector.extract_strided_slice %59 {offsets = [0, 96], sizes = [8, 32], strides = [1, 1]} : vector<8x128xf32> to vector<8x32xf32>
    %68 = math.tanh %66 : vector<8x32xf32>
    %69 = arith.mulf %67, %68 : vector<8x32xf32>
    %c2_i32 = arith.constant 2 : i32
    %70 = arith.index_cast %c2_i32 : i32 to index
    %c0_20 = arith.constant 0 : index
    %c0_21 = arith.constant 0 : index
    %71 = vector.load %arg2[%70, %c0_20, %c0_21] : memref<7x8x1xi32, #tpu.memory_space<vmem>>, vector<1x8x1xi32>
    %72 = vector.shape_cast %71 : vector<1x8x1xi32> to vector<8x1xi32>
    %73 = vector.broadcast %72 : vector<8x1xi32> to vector<8x128xi32>
    %74 = arith.cmpi eq, %12, %73 : vector<8x128xi32>
    %75 = arith.extui %74 : vector<8x128xi1> to vector<8x128xi32>
    %76 = arith.sitofp %75 : vector<8x128xi32> to vector<8x128xf32>
    %77 = arith.truncf %76 : vector<8x128xf32> to vector<8x128xbf16>
    %78 = arith.truncf %69 : vector<8x32xf32> to vector<8x32xbf16>
    %79 = tpu.concatenate %77, %78 in 1 : vector<8x128xbf16>, vector<8x32xbf16> -> vector<8x160xbf16>
    %cst_22 = arith.constant dense<0.000000e+00> : vector<8x128xf32>
    %80 = tpu.matmul %79, %0, %cst_22 {dimension_numbers = #tpu.dot_dimension_numbers<[1], [0], [0], [1], [0, 0, 1, 1], [], []>} : vector<8x160xbf16>, vector<160x128xbf16>, vector<8x128xf32> -> vector<8x128xf32>
    %81 = arith.addf %80, %5 : vector<8x128xf32>
    %82 = arith.negf %81 : vector<8x128xf32>
    %83 = math.exp %82 : vector<8x128xf32>
    %cst_23 = arith.constant 1.000000e+00 : f32
    %84 = vector.broadcast %cst_23 : f32 to vector<8x128xf32>
    %85 = arith.addf %84, %83 : vector<8x128xf32>
    %86 = arith.divf %84, %85 : vector<8x128xf32>
    %87 = math.tanh %81 : vector<8x128xf32>
    %88 = vector.extract_strided_slice %86 {offsets = [0, 32], sizes = [8, 32], strides = [1, 1]} : vector<8x128xf32> to vector<8x32xf32>
    %89 = arith.mulf %88, %66 : vector<8x32xf32>
    %90 = vector.extract_strided_slice %86 {offsets = [0, 0], sizes = [8, 32], strides = [1, 1]} : vector<8x128xf32> to vector<8x32xf32>
    %91 = vector.extract_strided_slice %87 {offsets = [0, 64], sizes = [8, 32], strides = [1, 1]} : vector<8x128xf32> to vector<8x32xf32>
    %92 = arith.mulf %90, %91 : vector<8x32xf32>
    %93 = arith.addf %89, %92 : vector<8x32xf32>
    %94 = vector.extract_strided_slice %86 {offsets = [0, 96], sizes = [8, 32], strides = [1, 1]} : vector<8x128xf32> to vector<8x32xf32>
    %95 = math.tanh %93 : vector<8x32xf32>
    %96 = arith.mulf %94, %95 : vector<8x32xf32>
    %c3_i32 = arith.constant 3 : i32
    %97 = arith.index_cast %c3_i32 : i32 to index
    %c0_24 = arith.constant 0 : index
    %c0_25 = arith.constant 0 : index
    %98 = vector.load %arg2[%97, %c0_24, %c0_25] : memref<7x8x1xi32, #tpu.memory_space<vmem>>, vector<1x8x1xi32>
    %99 = vector.shape_cast %98 : vector<1x8x1xi32> to vector<8x1xi32>
    %100 = vector.broadcast %99 : vector<8x1xi32> to vector<8x128xi32>
    %101 = arith.cmpi eq, %12, %100 : vector<8x128xi32>
    %102 = arith.extui %101 : vector<8x128xi1> to vector<8x128xi32>
    %103 = arith.sitofp %102 : vector<8x128xi32> to vector<8x128xf32>
    %104 = arith.truncf %103 : vector<8x128xf32> to vector<8x128xbf16>
    %105 = arith.truncf %96 : vector<8x32xf32> to vector<8x32xbf16>
    %106 = tpu.concatenate %104, %105 in 1 : vector<8x128xbf16>, vector<8x32xbf16> -> vector<8x160xbf16>
    %cst_26 = arith.constant dense<0.000000e+00> : vector<8x128xf32>
    %107 = tpu.matmul %106, %0, %cst_26 {dimension_numbers = #tpu.dot_dimension_numbers<[1], [0], [0], [1], [0, 0, 1, 1], [], []>} : vector<8x160xbf16>, vector<160x128xbf16>, vector<8x128xf32> -> vector<8x128xf32>
    %108 = arith.addf %107, %5 : vector<8x128xf32>
    %109 = arith.negf %108 : vector<8x128xf32>
    %110 = math.exp %109 : vector<8x128xf32>
    %cst_27 = arith.constant 1.000000e+00 : f32
    %111 = vector.broadcast %cst_27 : f32 to vector<8x128xf32>
    %112 = arith.addf %111, %110 : vector<8x128xf32>
    %113 = arith.divf %111, %112 : vector<8x128xf32>
    %114 = math.tanh %108 : vector<8x128xf32>
    %115 = vector.extract_strided_slice %113 {offsets = [0, 32], sizes = [8, 32], strides = [1, 1]} : vector<8x128xf32> to vector<8x32xf32>
    %116 = arith.mulf %115, %93 : vector<8x32xf32>
    %117 = vector.extract_strided_slice %113 {offsets = [0, 0], sizes = [8, 32], strides = [1, 1]} : vector<8x128xf32> to vector<8x32xf32>
    %118 = vector.extract_strided_slice %114 {offsets = [0, 64], sizes = [8, 32], strides = [1, 1]} : vector<8x128xf32> to vector<8x32xf32>
    %119 = arith.mulf %117, %118 : vector<8x32xf32>
    %120 = arith.addf %116, %119 : vector<8x32xf32>
    %121 = vector.extract_strided_slice %113 {offsets = [0, 96], sizes = [8, 32], strides = [1, 1]} : vector<8x128xf32> to vector<8x32xf32>
    %122 = math.tanh %120 : vector<8x32xf32>
    %123 = arith.mulf %121, %122 : vector<8x32xf32>
    %c4_i32 = arith.constant 4 : i32
    %124 = arith.index_cast %c4_i32 : i32 to index
    %c0_28 = arith.constant 0 : index
    %c0_29 = arith.constant 0 : index
    %125 = vector.load %arg2[%124, %c0_28, %c0_29] : memref<7x8x1xi32, #tpu.memory_space<vmem>>, vector<1x8x1xi32>
    %126 = vector.shape_cast %125 : vector<1x8x1xi32> to vector<8x1xi32>
    %127 = vector.broadcast %126 : vector<8x1xi32> to vector<8x128xi32>
    %128 = arith.cmpi eq, %12, %127 : vector<8x128xi32>
    %129 = arith.extui %128 : vector<8x128xi1> to vector<8x128xi32>
    %130 = arith.sitofp %129 : vector<8x128xi32> to vector<8x128xf32>
    %131 = arith.truncf %130 : vector<8x128xf32> to vector<8x128xbf16>
    %132 = arith.truncf %123 : vector<8x32xf32> to vector<8x32xbf16>
    %133 = tpu.concatenate %131, %132 in 1 : vector<8x128xbf16>, vector<8x32xbf16> -> vector<8x160xbf16>
    %cst_30 = arith.constant dense<0.000000e+00> : vector<8x128xf32>
    %134 = tpu.matmul %133, %0, %cst_30 {dimension_numbers = #tpu.dot_dimension_numbers<[1], [0], [0], [1], [0, 0, 1, 1], [], []>} : vector<8x160xbf16>, vector<160x128xbf16>, vector<8x128xf32> -> vector<8x128xf32>
    %135 = arith.addf %134, %5 : vector<8x128xf32>
    %136 = arith.negf %135 : vector<8x128xf32>
    %137 = math.exp %136 : vector<8x128xf32>
    %cst_31 = arith.constant 1.000000e+00 : f32
    %138 = vector.broadcast %cst_31 : f32 to vector<8x128xf32>
    %139 = arith.addf %138, %137 : vector<8x128xf32>
    %140 = arith.divf %138, %139 : vector<8x128xf32>
    %141 = math.tanh %135 : vector<8x128xf32>
    %142 = vector.extract_strided_slice %140 {offsets = [0, 32], sizes = [8, 32], strides = [1, 1]} : vector<8x128xf32> to vector<8x32xf32>
    %143 = arith.mulf %142, %120 : vector<8x32xf32>
    %144 = vector.extract_strided_slice %140 {offsets = [0, 0], sizes = [8, 32], strides = [1, 1]} : vector<8x128xf32> to vector<8x32xf32>
    %145 = vector.extract_strided_slice %141 {offsets = [0, 64], sizes = [8, 32], strides = [1, 1]} : vector<8x128xf32> to vector<8x32xf32>
    %146 = arith.mulf %144, %145 : vector<8x32xf32>
    %147 = arith.addf %143, %146 : vector<8x32xf32>
    %148 = vector.extract_strided_slice %140 {offsets = [0, 96], sizes = [8, 32], strides = [1, 1]} : vector<8x128xf32> to vector<8x32xf32>
    %149 = math.tanh %147 : vector<8x32xf32>
    %150 = arith.mulf %148, %149 : vector<8x32xf32>
    %c5_i32 = arith.constant 5 : i32
    %151 = arith.index_cast %c5_i32 : i32 to index
    %c0_32 = arith.constant 0 : index
    %c0_33 = arith.constant 0 : index
    %152 = vector.load %arg2[%151, %c0_32, %c0_33] : memref<7x8x1xi32, #tpu.memory_space<vmem>>, vector<1x8x1xi32>
    %153 = vector.shape_cast %152 : vector<1x8x1xi32> to vector<8x1xi32>
    %154 = vector.broadcast %153 : vector<8x1xi32> to vector<8x128xi32>
    %155 = arith.cmpi eq, %12, %154 : vector<8x128xi32>
    %156 = arith.extui %155 : vector<8x128xi1> to vector<8x128xi32>
    %157 = arith.sitofp %156 : vector<8x128xi32> to vector<8x128xf32>
    %158 = arith.truncf %157 : vector<8x128xf32> to vector<8x128xbf16>
    %159 = arith.truncf %150 : vector<8x32xf32> to vector<8x32xbf16>
    %160 = tpu.concatenate %158, %159 in 1 : vector<8x128xbf16>, vector<8x32xbf16> -> vector<8x160xbf16>
    %cst_34 = arith.constant dense<0.000000e+00> : vector<8x128xf32>
    %161 = tpu.matmul %160, %0, %cst_34 {dimension_numbers = #tpu.dot_dimension_numbers<[1], [0], [0], [1], [0, 0, 1, 1], [], []>} : vector<8x160xbf16>, vector<160x128xbf16>, vector<8x128xf32> -> vector<8x128xf32>
    %162 = arith.addf %161, %5 : vector<8x128xf32>
    %163 = arith.negf %162 : vector<8x128xf32>
    %164 = math.exp %163 : vector<8x128xf32>
    %cst_35 = arith.constant 1.000000e+00 : f32
    %165 = vector.broadcast %cst_35 : f32 to vector<8x128xf32>
    %166 = arith.addf %165, %164 : vector<8x128xf32>
    %167 = arith.divf %165, %166 : vector<8x128xf32>
    %168 = math.tanh %162 : vector<8x128xf32>
    %169 = vector.extract_strided_slice %167 {offsets = [0, 32], sizes = [8, 32], strides = [1, 1]} : vector<8x128xf32> to vector<8x32xf32>
    %170 = arith.mulf %169, %147 : vector<8x32xf32>
    %171 = vector.extract_strided_slice %167 {offsets = [0, 0], sizes = [8, 32], strides = [1, 1]} : vector<8x128xf32> to vector<8x32xf32>
    %172 = vector.extract_strided_slice %168 {offsets = [0, 64], sizes = [8, 32], strides = [1, 1]} : vector<8x128xf32> to vector<8x32xf32>
    %173 = arith.mulf %171, %172 : vector<8x32xf32>
    %174 = arith.addf %170, %173 : vector<8x32xf32>
    %175 = vector.extract_strided_slice %167 {offsets = [0, 96], sizes = [8, 32], strides = [1, 1]} : vector<8x128xf32> to vector<8x32xf32>
    %176 = math.tanh %174 : vector<8x32xf32>
    %177 = arith.mulf %175, %176 : vector<8x32xf32>
    %c6_i32 = arith.constant 6 : i32
    %178 = arith.index_cast %c6_i32 : i32 to index
    %c0_36 = arith.constant 0 : index
    %c0_37 = arith.constant 0 : index
    %179 = vector.load %arg2[%178, %c0_36, %c0_37] : memref<7x8x1xi32, #tpu.memory_space<vmem>>, vector<1x8x1xi32>
    %180 = vector.shape_cast %179 : vector<1x8x1xi32> to vector<8x1xi32>
    %181 = vector.broadcast %180 : vector<8x1xi32> to vector<8x128xi32>
    %182 = arith.cmpi eq, %12, %181 : vector<8x128xi32>
    %183 = arith.extui %182 : vector<8x128xi1> to vector<8x128xi32>
    %184 = arith.sitofp %183 : vector<8x128xi32> to vector<8x128xf32>
    %185 = arith.truncf %184 : vector<8x128xf32> to vector<8x128xbf16>
    %186 = arith.truncf %177 : vector<8x32xf32> to vector<8x32xbf16>
    %187 = tpu.concatenate %185, %186 in 1 : vector<8x128xbf16>, vector<8x32xbf16> -> vector<8x160xbf16>
    %cst_38 = arith.constant dense<0.000000e+00> : vector<8x128xf32>
    %188 = tpu.matmul %187, %0, %cst_38 {dimension_numbers = #tpu.dot_dimension_numbers<[1], [0], [0], [1], [0, 0, 1, 1], [], []>} : vector<8x160xbf16>, vector<160x128xbf16>, vector<8x128xf32> -> vector<8x128xf32>
    %189 = arith.addf %188, %5 : vector<8x128xf32>
    %190 = arith.negf %189 : vector<8x128xf32>
    %191 = math.exp %190 : vector<8x128xf32>
    %cst_39 = arith.constant 1.000000e+00 : f32
    %192 = vector.broadcast %cst_39 : f32 to vector<8x128xf32>
    %193 = arith.addf %192, %191 : vector<8x128xf32>
    %194 = arith.divf %192, %193 : vector<8x128xf32>
    %195 = math.tanh %189 : vector<8x128xf32>
    %196 = vector.extract_strided_slice %194 {offsets = [0, 32], sizes = [8, 32], strides = [1, 1]} : vector<8x128xf32> to vector<8x32xf32>
    %197 = arith.mulf %196, %174 : vector<8x32xf32>
    %198 = vector.extract_strided_slice %194 {offsets = [0, 0], sizes = [8, 32], strides = [1, 1]} : vector<8x128xf32> to vector<8x32xf32>
    %199 = vector.extract_strided_slice %195 {offsets = [0, 64], sizes = [8, 32], strides = [1, 1]} : vector<8x128xf32> to vector<8x32xf32>
    %200 = arith.mulf %198, %199 : vector<8x32xf32>
    %201 = arith.addf %197, %200 : vector<8x32xf32>
    %202 = vector.extract_strided_slice %194 {offsets = [0, 96], sizes = [8, 32], strides = [1, 1]} : vector<8x128xf32> to vector<8x32xf32>
    %203 = math.tanh %201 : vector<8x32xf32>
    %204 = arith.mulf %202, %203 : vector<8x32xf32>
    %c7_i32 = arith.constant 7 : i32
    %cst_40 = arith.constant 0.000000e+00 : f32
    %205 = vector.broadcast %cst_40 : f32 to vector<8x128xf32>
    %c0_41 = arith.constant 0 : index
    %c0_42 = arith.constant 0 : index
    %c0_43 = arith.constant 0 : index
    %206 = vector.load %arg10[%c0_41, %c0_42, %c0_43] : memref<8x8x128xf32, #tpu.memory_space<vmem>>, vector<1x8x128xf32>
    %207 = vector.shape_cast %206 : vector<1x8x128xf32> to vector<8x128xf32>
    %208 = vector.shape_cast %205 : vector<8x128xf32> to vector<1x8x128xf32>
    tpu.vector_store %arg10[%c0_41, %c0_42, %c0_43], %208 {strides = array<i32>} : memref<8x8x128xf32, #tpu.memory_space<vmem>>, vector<1x8x128xf32>,
    %c0_44 = arith.constant 0 : index
    %c0_45 = arith.constant 0 : index
    %c0_46 = arith.constant 0 : index
    %209 = vector.load %arg3[%c0_44, %c0_45, %c0_46] : memref<8x8x1xi32, #tpu.memory_space<vmem>>, vector<1x8x1xi32>
    %210 = vector.shape_cast %209 : vector<1x8x1xi32> to vector<8x1xi32>
    %211 = vector.broadcast %210 : vector<8x1xi32> to vector<8x128xi32>
    %212 = arith.cmpi eq, %13, %211 : vector<8x128xi32>
    %213 = arith.extui %212 : vector<8x128xi1> to vector<8x128xi32>
    %214 = arith.sitofp %213 : vector<8x128xi32> to vector<8x128xf32>
    %215 = arith.truncf %214 : vector<8x128xf32> to vector<8x128xbf16>
    %c1_i32_47 = arith.constant 1 : i32
    %216 = arith.truncf %204 : vector<8x32xf32> to vector<8x32xbf16>
    %217 = tpu.concatenate %215, %216 in 1 : vector<8x128xbf16>, vector<8x32xbf16> -> vector<8x160xbf16>
    %cst_48 = arith.constant dense<0.000000e+00> : vector<8x128xf32>
    %218 = tpu.matmul %217, %1, %cst_48 {dimension_numbers = #tpu.dot_dimension_numbers<[1], [0], [0], [1], [0, 0, 1, 1], [], []>} : vector<8x160xbf16>, vector<160x128xbf16>, vector<8x128xf32> -> vector<8x128xf32>
    %219 = arith.addf %218, %8 : vector<8x128xf32>
    %220 = arith.negf %219 : vector<8x128xf32>
    %221 = math.exp %220 : vector<8x128xf32>
    %cst_49 = arith.constant 1.000000e+00 : f32
    %222 = vector.broadcast %cst_49 : f32 to vector<8x128xf32>
    %223 = arith.addf %222, %221 : vector<8x128xf32>
    %224 = arith.divf %222, %223 : vector<8x128xf32>
    %225 = math.tanh %219 : vector<8x128xf32>
    %226 = vector.extract_strided_slice %224 {offsets = [0, 32], sizes = [8, 32], strides = [1, 1]} : vector<8x128xf32> to vector<8x32xf32>
    %227 = arith.mulf %226, %201 : vector<8x32xf32>
    %228 = vector.extract_strided_slice %224 {offsets = [0, 0], sizes = [8, 32], strides = [1, 1]} : vector<8x128xf32> to vector<8x32xf32>
    %229 = vector.extract_strided_slice %225 {offsets = [0, 64], sizes = [8, 32], strides = [1, 1]} : vector<8x128xf32> to vector<8x32xf32>
    %230 = arith.mulf %228, %229 : vector<8x32xf32>
    %231 = arith.addf %227, %230 : vector<8x32xf32>
    %232 = vector.extract_strided_slice %224 {offsets = [0, 96], sizes = [8, 32], strides = [1, 1]} : vector<8x128xf32> to vector<8x32xf32>
    %233 = math.tanh %231 : vector<8x32xf32>
    %234 = arith.mulf %232, %233 : vector<8x32xf32>
    %235 = arith.truncf %234 : vector<8x32xf32> to vector<8x32xbf16>
    %cst_50 = arith.constant dense<0.000000e+00> : vector<8x128xf32>
    %236 = tpu.matmul %235, %2, %cst_50 {dimension_numbers = #tpu.dot_dimension_numbers<[1], [0], [0], [1], [0, 0, 1, 1], [], []>} : vector<8x32xbf16>, vector<32x128xbf16>, vector<8x128xf32> -> vector<8x128xf32>
    %237 = arith.addf %236, %11 : vector<8x128xf32>
    %238 = arith.index_cast %c1_i32_47 : i32 to index
    %c0_51 = arith.constant 0 : index
    %c0_52 = arith.constant 0 : index
    %239 = vector.load %arg10[%238, %c0_51, %c0_52] : memref<8x8x128xf32, #tpu.memory_space<vmem>>, vector<1x8x128xf32>
    %240 = vector.shape_cast %239 : vector<1x8x128xf32> to vector<8x128xf32>
    %241 = vector.shape_cast %237 : vector<8x128xf32> to vector<1x8x128xf32>
    tpu.vector_store %arg10[%238, %c0_51, %c0_52], %241 {strides = array<i32>} : memref<8x8x128xf32, #tpu.memory_space<vmem>>, vector<1x8x128xf32>,
    %cst_53 = arith.constant dense<0xFF800000> : vector<8xf32>
    %242 = vector.multi_reduction <maximumf>, %237, %cst_53 [1] : vector<8x128xf32> to vector<8xf32>
    %243 = vector.shape_cast %242 : vector<8xf32> to vector<8x1xf32>
    %244 = vector.broadcast %243 : vector<8x1xf32> to vector<8x128xf32>
    %245 = arith.cmpf oeq, %237, %244 : vector<8x128xf32>
    %c128_i32 = arith.constant 128 : i32
    %246 = vector.broadcast %c128_i32 : i32 to vector<8x128xi32>
    %247 = arith.select %245, %13, %246 : vector<8x128xi1>, vector<8x128xi32>
    %cst_54 = arith.constant dense<2147483647> : vector<8xi32>
    %248 = vector.multi_reduction <minsi>, %247, %cst_54 [1] : vector<8x128xi32> to vector<8xi32>
    %249 = vector.shape_cast %248 : vector<8xi32> to vector<8x1xi32>
    %250 = vector.broadcast %249 : vector<8x1xi32> to vector<8x128xi32>
    %251 = arith.cmpi eq, %13, %250 : vector<8x128xi32>
    %252 = arith.extui %251 : vector<8x128xi1> to vector<8x128xi32>
    %253 = arith.sitofp %252 : vector<8x128xi32> to vector<8x128xf32>
    %254 = arith.truncf %253 : vector<8x128xf32> to vector<8x128xbf16>
    %255 = arith.index_cast %c1_i32_47 : i32 to index
    %c0_55 = arith.constant 0 : index
    %c0_56 = arith.constant 0 : index
    %256 = vector.load %arg3[%255, %c0_55, %c0_56] : memref<8x8x1xi32, #tpu.memory_space<vmem>>, vector<1x8x1xi32>
    %257 = vector.shape_cast %256 : vector<1x8x1xi32> to vector<8x1xi32>
    %258 = vector.broadcast %257 : vector<8x1xi32> to vector<8x128xi32>
    %259 = arith.cmpi eq, %13, %258 : vector<8x128xi32>
    %260 = arith.extui %259 : vector<8x128xi1> to vector<8x128xi32>
    %261 = arith.sitofp %260 : vector<8x128xi32> to vector<8x128xf32>
    %262 = arith.truncf %261 : vector<8x128xf32> to vector<8x128xbf16>
    %263 = arith.index_cast %c1_i32_47 : i32 to index
    %264 = memref.load %arg1[%263] : memref<8xi32, #tpu.memory_space<smem>>
    %c1_i32_57 = arith.constant 1 : i32
    %265 = arith.cmpi eq, %264, %c1_i32_57 : i32
    %266 = arith.select %265, %262, %254 : vector<8x128xbf16>
    %c2_i32_58 = arith.constant 2 : i32
    %267 = arith.truncf %234 : vector<8x32xf32> to vector<8x32xbf16>
    %268 = tpu.concatenate %266, %267 in 1 : vector<8x128xbf16>, vector<8x32xbf16> -> vector<8x160xbf16>
    %cst_59 = arith.constant dense<0.000000e+00> : vector<8x128xf32>
    %269 = tpu.matmul %268, %1, %cst_59 {dimension_numbers = #tpu.dot_dimension_numbers<[1], [0], [0], [1], [0, 0, 1, 1], [], []>} : vector<8x160xbf16>, vector<160x128xbf16>, vector<8x128xf32> -> vector<8x128xf32>
    %270 = arith.addf %269, %8 : vector<8x128xf32>
    %271 = arith.negf %270 : vector<8x128xf32>
    %272 = math.exp %271 : vector<8x128xf32>
    %cst_60 = arith.constant 1.000000e+00 : f32
    %273 = vector.broadcast %cst_60 : f32 to vector<8x128xf32>
    %274 = arith.addf %273, %272 : vector<8x128xf32>
    %275 = arith.divf %273, %274 : vector<8x128xf32>
    %276 = math.tanh %270 : vector<8x128xf32>
    %277 = vector.extract_strided_slice %275 {offsets = [0, 32], sizes = [8, 32], strides = [1, 1]} : vector<8x128xf32> to vector<8x32xf32>
    %278 = arith.mulf %277, %231 : vector<8x32xf32>
    %279 = vector.extract_strided_slice %275 {offsets = [0, 0], sizes = [8, 32], strides = [1, 1]} : vector<8x128xf32> to vector<8x32xf32>
    %280 = vector.extract_strided_slice %276 {offsets = [0, 64], sizes = [8, 32], strides = [1, 1]} : vector<8x128xf32> to vector<8x32xf32>
    %281 = arith.mulf %279, %280 : vector<8x32xf32>
    %282 = arith.addf %278, %281 : vector<8x32xf32>
    %283 = vector.extract_strided_slice %275 {offsets = [0, 96], sizes = [8, 32], strides = [1, 1]} : vector<8x128xf32> to vector<8x32xf32>
    %284 = math.tanh %282 : vector<8x32xf32>
    %285 = arith.mulf %283, %284 : vector<8x32xf32>
    %286 = arith.truncf %285 : vector<8x32xf32> to vector<8x32xbf16>
    %cst_61 = arith.constant dense<0.000000e+00> : vector<8x128xf32>
    %287 = tpu.matmul %286, %2, %cst_61 {dimension_numbers = #tpu.dot_dimension_numbers<[1], [0], [0], [1], [0, 0, 1, 1], [], []>} : vector<8x32xbf16>, vector<32x128xbf16>, vector<8x128xf32> -> vector<8x128xf32>
    %288 = arith.addf %287, %11 : vector<8x128xf32>
    %289 = arith.index_cast %c2_i32_58 : i32 to index
    %c0_62 = arith.constant 0 : index
    %c0_63 = arith.constant 0 : index
    %290 = vector.load %arg10[%289, %c0_62, %c0_63] : memref<8x8x128xf32, #tpu.memory_space<vmem>>, vector<1x8x128xf32>
    %291 = vector.shape_cast %290 : vector<1x8x128xf32> to vector<8x128xf32>
    %292 = vector.shape_cast %288 : vector<8x128xf32> to vector<1x8x128xf32>
    tpu.vector_store %arg10[%289, %c0_62, %c0_63], %292 {strides = array<i32>} : memref<8x8x128xf32, #tpu.memory_space<vmem>>, vector<1x8x128xf32>,
    %cst_64 = arith.constant dense<0xFF800000> : vector<8xf32>
    %293 = vector.multi_reduction <maximumf>, %288, %cst_64 [1] : vector<8x128xf32> to vector<8xf32>
    %294 = vector.shape_cast %293 : vector<8xf32> to vector<8x1xf32>
    %295 = vector.broadcast %294 : vector<8x1xf32> to vector<8x128xf32>
    %296 = arith.cmpf oeq, %288, %295 : vector<8x128xf32>
    %c128_i32_65 = arith.constant 128 : i32
    %297 = vector.broadcast %c128_i32_65 : i32 to vector<8x128xi32>
    %298 = arith.select %296, %13, %297 : vector<8x128xi1>, vector<8x128xi32>
    %cst_66 = arith.constant dense<2147483647> : vector<8xi32>
    %299 = vector.multi_reduction <minsi>, %298, %cst_66 [1] : vector<8x128xi32> to vector<8xi32>
    %300 = vector.shape_cast %299 : vector<8xi32> to vector<8x1xi32>
    %301 = vector.broadcast %300 : vector<8x1xi32> to vector<8x128xi32>
    %302 = arith.cmpi eq, %13, %301 : vector<8x128xi32>
    %303 = arith.extui %302 : vector<8x128xi1> to vector<8x128xi32>
    %304 = arith.sitofp %303 : vector<8x128xi32> to vector<8x128xf32>
    %305 = arith.truncf %304 : vector<8x128xf32> to vector<8x128xbf16>
    %306 = arith.index_cast %c2_i32_58 : i32 to index
    %c0_67 = arith.constant 0 : index
    %c0_68 = arith.constant 0 : index
    %307 = vector.load %arg3[%306, %c0_67, %c0_68] : memref<8x8x1xi32, #tpu.memory_space<vmem>>, vector<1x8x1xi32>
    %308 = vector.shape_cast %307 : vector<1x8x1xi32> to vector<8x1xi32>
    %309 = vector.broadcast %308 : vector<8x1xi32> to vector<8x128xi32>
    %310 = arith.cmpi eq, %13, %309 : vector<8x128xi32>
    %311 = arith.extui %310 : vector<8x128xi1> to vector<8x128xi32>
    %312 = arith.sitofp %311 : vector<8x128xi32> to vector<8x128xf32>
    %313 = arith.truncf %312 : vector<8x128xf32> to vector<8x128xbf16>
    %314 = arith.index_cast %c2_i32_58 : i32 to index
    %315 = memref.load %arg1[%314] : memref<8xi32, #tpu.memory_space<smem>>
    %c1_i32_69 = arith.constant 1 : i32
    %316 = arith.cmpi eq, %315, %c1_i32_69 : i32
    %317 = arith.select %316, %313, %305 : vector<8x128xbf16>
    %c3_i32_70 = arith.constant 3 : i32
    %318 = arith.truncf %285 : vector<8x32xf32> to vector<8x32xbf16>
    %319 = tpu.concatenate %317, %318 in 1 : vector<8x128xbf16>, vector<8x32xbf16> -> vector<8x160xbf16>
    %cst_71 = arith.constant dense<0.000000e+00> : vector<8x128xf32>
    %320 = tpu.matmul %319, %1, %cst_71 {dimension_numbers = #tpu.dot_dimension_numbers<[1], [0], [0], [1], [0, 0, 1, 1], [], []>} : vector<8x160xbf16>, vector<160x128xbf16>, vector<8x128xf32> -> vector<8x128xf32>
    %321 = arith.addf %320, %8 : vector<8x128xf32>
    %322 = arith.negf %321 : vector<8x128xf32>
    %323 = math.exp %322 : vector<8x128xf32>
    %cst_72 = arith.constant 1.000000e+00 : f32
    %324 = vector.broadcast %cst_72 : f32 to vector<8x128xf32>
    %325 = arith.addf %324, %323 : vector<8x128xf32>
    %326 = arith.divf %324, %325 : vector<8x128xf32>
    %327 = math.tanh %321 : vector<8x128xf32>
    %328 = vector.extract_strided_slice %326 {offsets = [0, 32], sizes = [8, 32], strides = [1, 1]} : vector<8x128xf32> to vector<8x32xf32>
    %329 = arith.mulf %328, %282 : vector<8x32xf32>
    %330 = vector.extract_strided_slice %326 {offsets = [0, 0], sizes = [8, 32], strides = [1, 1]} : vector<8x128xf32> to vector<8x32xf32>
    %331 = vector.extract_strided_slice %327 {offsets = [0, 64], sizes = [8, 32], strides = [1, 1]} : vector<8x128xf32> to vector<8x32xf32>
    %332 = arith.mulf %330, %331 : vector<8x32xf32>
    %333 = arith.addf %329, %332 : vector<8x32xf32>
    %334 = vector.extract_strided_slice %326 {offsets = [0, 96], sizes = [8, 32], strides = [1, 1]} : vector<8x128xf32> to vector<8x32xf32>
    %335 = math.tanh %333 : vector<8x32xf32>
    %336 = arith.mulf %334, %335 : vector<8x32xf32>
    %337 = arith.truncf %336 : vector<8x32xf32> to vector<8x32xbf16>
    %cst_73 = arith.constant dense<0.000000e+00> : vector<8x128xf32>
    %338 = tpu.matmul %337, %2, %cst_73 {dimension_numbers = #tpu.dot_dimension_numbers<[1], [0], [0], [1], [0, 0, 1, 1], [], []>} : vector<8x32xbf16>, vector<32x128xbf16>, vector<8x128xf32> -> vector<8x128xf32>
    %339 = arith.addf %338, %11 : vector<8x128xf32>
    %340 = arith.index_cast %c3_i32_70 : i32 to index
    %c0_74 = arith.constant 0 : index
    %c0_75 = arith.constant 0 : index
    %341 = vector.load %arg10[%340, %c0_74, %c0_75] : memref<8x8x128xf32, #tpu.memory_space<vmem>>, vector<1x8x128xf32>
    %342 = vector.shape_cast %341 : vector<1x8x128xf32> to vector<8x128xf32>
    %343 = vector.shape_cast %339 : vector<8x128xf32> to vector<1x8x128xf32>
    tpu.vector_store %arg10[%340, %c0_74, %c0_75], %343 {strides = array<i32>} : memref<8x8x128xf32, #tpu.memory_space<vmem>>, vector<1x8x128xf32>,
    %cst_76 = arith.constant dense<0xFF800000> : vector<8xf32>
    %344 = vector.multi_reduction <maximumf>, %339, %cst_76 [1] : vector<8x128xf32> to vector<8xf32>
    %345 = vector.shape_cast %344 : vector<8xf32> to vector<8x1xf32>
    %346 = vector.broadcast %345 : vector<8x1xf32> to vector<8x128xf32>
    %347 = arith.cmpf oeq, %339, %346 : vector<8x128xf32>
    %c128_i32_77 = arith.constant 128 : i32
    %348 = vector.broadcast %c128_i32_77 : i32 to vector<8x128xi32>
    %349 = arith.select %347, %13, %348 : vector<8x128xi1>, vector<8x128xi32>
    %cst_78 = arith.constant dense<2147483647> : vector<8xi32>
    %350 = vector.multi_reduction <minsi>, %349, %cst_78 [1] : vector<8x128xi32> to vector<8xi32>
    %351 = vector.shape_cast %350 : vector<8xi32> to vector<8x1xi32>
    %352 = vector.broadcast %351 : vector<8x1xi32> to vector<8x128xi32>
    %353 = arith.cmpi eq, %13, %352 : vector<8x128xi32>
    %354 = arith.extui %353 : vector<8x128xi1> to vector<8x128xi32>
    %355 = arith.sitofp %354 : vector<8x128xi32> to vector<8x128xf32>
    %356 = arith.truncf %355 : vector<8x128xf32> to vector<8x128xbf16>
    %357 = arith.index_cast %c3_i32_70 : i32 to index
    %c0_79 = arith.constant 0 : index
    %c0_80 = arith.constant 0 : index
    %358 = vector.load %arg3[%357, %c0_79, %c0_80] : memref<8x8x1xi32, #tpu.memory_space<vmem>>, vector<1x8x1xi32>
    %359 = vector.shape_cast %358 : vector<1x8x1xi32> to vector<8x1xi32>
    %360 = vector.broadcast %359 : vector<8x1xi32> to vector<8x128xi32>
    %361 = arith.cmpi eq, %13, %360 : vector<8x128xi32>
    %362 = arith.extui %361 : vector<8x128xi1> to vector<8x128xi32>
    %363 = arith.sitofp %362 : vector<8x128xi32> to vector<8x128xf32>
    %364 = arith.truncf %363 : vector<8x128xf32> to vector<8x128xbf16>
    %365 = arith.index_cast %c3_i32_70 : i32 to index
    %366 = memref.load %arg1[%365] : memref<8xi32, #tpu.memory_space<smem>>
    %c1_i32_81 = arith.constant 1 : i32
    %367 = arith.cmpi eq, %366, %c1_i32_81 : i32
    %368 = arith.select %367, %364, %356 : vector<8x128xbf16>
    %c4_i32_82 = arith.constant 4 : i32
    %369 = arith.truncf %336 : vector<8x32xf32> to vector<8x32xbf16>
    %370 = tpu.concatenate %368, %369 in 1 : vector<8x128xbf16>, vector<8x32xbf16> -> vector<8x160xbf16>
    %cst_83 = arith.constant dense<0.000000e+00> : vector<8x128xf32>
    %371 = tpu.matmul %370, %1, %cst_83 {dimension_numbers = #tpu.dot_dimension_numbers<[1], [0], [0], [1], [0, 0, 1, 1], [], []>} : vector<8x160xbf16>, vector<160x128xbf16>, vector<8x128xf32> -> vector<8x128xf32>
    %372 = arith.addf %371, %8 : vector<8x128xf32>
    %373 = arith.negf %372 : vector<8x128xf32>
    %374 = math.exp %373 : vector<8x128xf32>
    %cst_84 = arith.constant 1.000000e+00 : f32
    %375 = vector.broadcast %cst_84 : f32 to vector<8x128xf32>
    %376 = arith.addf %375, %374 : vector<8x128xf32>
    %377 = arith.divf %375, %376 : vector<8x128xf32>
    %378 = math.tanh %372 : vector<8x128xf32>
    %379 = vector.extract_strided_slice %377 {offsets = [0, 32], sizes = [8, 32], strides = [1, 1]} : vector<8x128xf32> to vector<8x32xf32>
    %380 = arith.mulf %379, %333 : vector<8x32xf32>
    %381 = vector.extract_strided_slice %377 {offsets = [0, 0], sizes = [8, 32], strides = [1, 1]} : vector<8x128xf32> to vector<8x32xf32>
    %382 = vector.extract_strided_slice %378 {offsets = [0, 64], sizes = [8, 32], strides = [1, 1]} : vector<8x128xf32> to vector<8x32xf32>
    %383 = arith.mulf %381, %382 : vector<8x32xf32>
    %384 = arith.addf %380, %383 : vector<8x32xf32>
    %385 = vector.extract_strided_slice %377 {offsets = [0, 96], sizes = [8, 32], strides = [1, 1]} : vector<8x128xf32> to vector<8x32xf32>
    %386 = math.tanh %384 : vector<8x32xf32>
    %387 = arith.mulf %385, %386 : vector<8x32xf32>
    %388 = arith.truncf %387 : vector<8x32xf32> to vector<8x32xbf16>
    %cst_85 = arith.constant dense<0.000000e+00> : vector<8x128xf32>
    %389 = tpu.matmul %388, %2, %cst_85 {dimension_numbers = #tpu.dot_dimension_numbers<[1], [0], [0], [1], [0, 0, 1, 1], [], []>} : vector<8x32xbf16>, vector<32x128xbf16>, vector<8x128xf32> -> vector<8x128xf32>
    %390 = arith.addf %389, %11 : vector<8x128xf32>
    %391 = arith.index_cast %c4_i32_82 : i32 to index
    %c0_86 = arith.constant 0 : index
    %c0_87 = arith.constant 0 : index
    %392 = vector.load %arg10[%391, %c0_86, %c0_87] : memref<8x8x128xf32, #tpu.memory_space<vmem>>, vector<1x8x128xf32>
    %393 = vector.shape_cast %392 : vector<1x8x128xf32> to vector<8x128xf32>
    %394 = vector.shape_cast %390 : vector<8x128xf32> to vector<1x8x128xf32>
    tpu.vector_store %arg10[%391, %c0_86, %c0_87], %394 {strides = array<i32>} : memref<8x8x128xf32, #tpu.memory_space<vmem>>, vector<1x8x128xf32>,
    %cst_88 = arith.constant dense<0xFF800000> : vector<8xf32>
    %395 = vector.multi_reduction <maximumf>, %390, %cst_88 [1] : vector<8x128xf32> to vector<8xf32>
    %396 = vector.shape_cast %395 : vector<8xf32> to vector<8x1xf32>
    %397 = vector.broadcast %396 : vector<8x1xf32> to vector<8x128xf32>
    %398 = arith.cmpf oeq, %390, %397 : vector<8x128xf32>
    %c128_i32_89 = arith.constant 128 : i32
    %399 = vector.broadcast %c128_i32_89 : i32 to vector<8x128xi32>
    %400 = arith.select %398, %13, %399 : vector<8x128xi1>, vector<8x128xi32>
    %cst_90 = arith.constant dense<2147483647> : vector<8xi32>
    %401 = vector.multi_reduction <minsi>, %400, %cst_90 [1] : vector<8x128xi32> to vector<8xi32>
    %402 = vector.shape_cast %401 : vector<8xi32> to vector<8x1xi32>
    %403 = vector.broadcast %402 : vector<8x1xi32> to vector<8x128xi32>
    %404 = arith.cmpi eq, %13, %403 : vector<8x128xi32>
    %405 = arith.extui %404 : vector<8x128xi1> to vector<8x128xi32>
    %406 = arith.sitofp %405 : vector<8x128xi32> to vector<8x128xf32>
    %407 = arith.truncf %406 : vector<8x128xf32> to vector<8x128xbf16>
    %408 = arith.index_cast %c4_i32_82 : i32 to index
    %c0_91 = arith.constant 0 : index
    %c0_92 = arith.constant 0 : index
    %409 = vector.load %arg3[%408, %c0_91, %c0_92] : memref<8x8x1xi32, #tpu.memory_space<vmem>>, vector<1x8x1xi32>
    %410 = vector.shape_cast %409 : vector<1x8x1xi32> to vector<8x1xi32>
    %411 = vector.broadcast %410 : vector<8x1xi32> to vector<8x128xi32>
    %412 = arith.cmpi eq, %13, %411 : vector<8x128xi32>
    %413 = arith.extui %412 : vector<8x128xi1> to vector<8x128xi32>
    %414 = arith.sitofp %413 : vector<8x128xi32> to vector<8x128xf32>
    %415 = arith.truncf %414 : vector<8x128xf32> to vector<8x128xbf16>
    %416 = arith.index_cast %c4_i32_82 : i32 to index
    %417 = memref.load %arg1[%416] : memref<8xi32, #tpu.memory_space<smem>>
    %c1_i32_93 = arith.constant 1 : i32
    %418 = arith.cmpi eq, %417, %c1_i32_93 : i32
    %419 = arith.select %418, %415, %407 : vector<8x128xbf16>
    %c5_i32_94 = arith.constant 5 : i32
    %420 = arith.truncf %387 : vector<8x32xf32> to vector<8x32xbf16>
    %421 = tpu.concatenate %419, %420 in 1 : vector<8x128xbf16>, vector<8x32xbf16> -> vector<8x160xbf16>
    %cst_95 = arith.constant dense<0.000000e+00> : vector<8x128xf32>
    %422 = tpu.matmul %421, %1, %cst_95 {dimension_numbers = #tpu.dot_dimension_numbers<[1], [0], [0], [1], [0, 0, 1, 1], [], []>} : vector<8x160xbf16>, vector<160x128xbf16>, vector<8x128xf32> -> vector<8x128xf32>
    %423 = arith.addf %422, %8 : vector<8x128xf32>
    %424 = arith.negf %423 : vector<8x128xf32>
    %425 = math.exp %424 : vector<8x128xf32>
    %cst_96 = arith.constant 1.000000e+00 : f32
    %426 = vector.broadcast %cst_96 : f32 to vector<8x128xf32>
    %427 = arith.addf %426, %425 : vector<8x128xf32>
    %428 = arith.divf %426, %427 : vector<8x128xf32>
    %429 = math.tanh %423 : vector<8x128xf32>
    %430 = vector.extract_strided_slice %428 {offsets = [0, 32], sizes = [8, 32], strides = [1, 1]} : vector<8x128xf32> to vector<8x32xf32>
    %431 = arith.mulf %430, %384 : vector<8x32xf32>
    %432 = vector.extract_strided_slice %428 {offsets = [0, 0], sizes = [8, 32], strides = [1, 1]} : vector<8x128xf32> to vector<8x32xf32>
    %433 = vector.extract_strided_slice %429 {offsets = [0, 64], sizes = [8, 32], strides = [1, 1]} : vector<8x128xf32> to vector<8x32xf32>
    %434 = arith.mulf %432, %433 : vector<8x32xf32>
    %435 = arith.addf %431, %434 : vector<8x32xf32>
    %436 = vector.extract_strided_slice %428 {offsets = [0, 96], sizes = [8, 32], strides = [1, 1]} : vector<8x128xf32> to vector<8x32xf32>
    %437 = math.tanh %435 : vector<8x32xf32>
    %438 = arith.mulf %436, %437 : vector<8x32xf32>
    %439 = arith.truncf %438 : vector<8x32xf32> to vector<8x32xbf16>
    %cst_97 = arith.constant dense<0.000000e+00> : vector<8x128xf32>
    %440 = tpu.matmul %439, %2, %cst_97 {dimension_numbers = #tpu.dot_dimension_numbers<[1], [0], [0], [1], [0, 0, 1, 1], [], []>} : vector<8x32xbf16>, vector<32x128xbf16>, vector<8x128xf32> -> vector<8x128xf32>
    %441 = arith.addf %440, %11 : vector<8x128xf32>
    %442 = arith.index_cast %c5_i32_94 : i32 to index
    %c0_98 = arith.constant 0 : index
    %c0_99 = arith.constant 0 : index
    %443 = vector.load %arg10[%442, %c0_98, %c0_99] : memref<8x8x128xf32, #tpu.memory_space<vmem>>, vector<1x8x128xf32>
    %444 = vector.shape_cast %443 : vector<1x8x128xf32> to vector<8x128xf32>
    %445 = vector.shape_cast %441 : vector<8x128xf32> to vector<1x8x128xf32>
    tpu.vector_store %arg10[%442, %c0_98, %c0_99], %445 {strides = array<i32>} : memref<8x8x128xf32, #tpu.memory_space<vmem>>, vector<1x8x128xf32>,
    %cst_100 = arith.constant dense<0xFF800000> : vector<8xf32>
    %446 = vector.multi_reduction <maximumf>, %441, %cst_100 [1] : vector<8x128xf32> to vector<8xf32>
    %447 = vector.shape_cast %446 : vector<8xf32> to vector<8x1xf32>
    %448 = vector.broadcast %447 : vector<8x1xf32> to vector<8x128xf32>
    %449 = arith.cmpf oeq, %441, %448 : vector<8x128xf32>
    %c128_i32_101 = arith.constant 128 : i32
    %450 = vector.broadcast %c128_i32_101 : i32 to vector<8x128xi32>
    %451 = arith.select %449, %13, %450 : vector<8x128xi1>, vector<8x128xi32>
    %cst_102 = arith.constant dense<2147483647> : vector<8xi32>
    %452 = vector.multi_reduction <minsi>, %451, %cst_102 [1] : vector<8x128xi32> to vector<8xi32>
    %453 = vector.shape_cast %452 : vector<8xi32> to vector<8x1xi32>
    %454 = vector.broadcast %453 : vector<8x1xi32> to vector<8x128xi32>
    %455 = arith.cmpi eq, %13, %454 : vector<8x128xi32>
    %456 = arith.extui %455 : vector<8x128xi1> to vector<8x128xi32>
    %457 = arith.sitofp %456 : vector<8x128xi32> to vector<8x128xf32>
    %458 = arith.truncf %457 : vector<8x128xf32> to vector<8x128xbf16>
    %459 = arith.index_cast %c5_i32_94 : i32 to index
    %c0_103 = arith.constant 0 : index
    %c0_104 = arith.constant 0 : index
    %460 = vector.load %arg3[%459, %c0_103, %c0_104] : memref<8x8x1xi32, #tpu.memory_space<vmem>>, vector<1x8x1xi32>
    %461 = vector.shape_cast %460 : vector<1x8x1xi32> to vector<8x1xi32>
    %462 = vector.broadcast %461 : vector<8x1xi32> to vector<8x128xi32>
    %463 = arith.cmpi eq, %13, %462 : vector<8x128xi32>
    %464 = arith.extui %463 : vector<8x128xi1> to vector<8x128xi32>
    %465 = arith.sitofp %464 : vector<8x128xi32> to vector<8x128xf32>
    %466 = arith.truncf %465 : vector<8x128xf32> to vector<8x128xbf16>
    %467 = arith.index_cast %c5_i32_94 : i32 to index
    %468 = memref.load %arg1[%467] : memref<8xi32, #tpu.memory_space<smem>>
    %c1_i32_105 = arith.constant 1 : i32
    %469 = arith.cmpi eq, %468, %c1_i32_105 : i32
    %470 = arith.select %469, %466, %458 : vector<8x128xbf16>
    %c6_i32_106 = arith.constant 6 : i32
    %471 = arith.truncf %438 : vector<8x32xf32> to vector<8x32xbf16>
    %472 = tpu.concatenate %470, %471 in 1 : vector<8x128xbf16>, vector<8x32xbf16> -> vector<8x160xbf16>
    %cst_107 = arith.constant dense<0.000000e+00> : vector<8x128xf32>
    %473 = tpu.matmul %472, %1, %cst_107 {dimension_numbers = #tpu.dot_dimension_numbers<[1], [0], [0], [1], [0, 0, 1, 1], [], []>} : vector<8x160xbf16>, vector<160x128xbf16>, vector<8x128xf32> -> vector<8x128xf32>
    %474 = arith.addf %473, %8 : vector<8x128xf32>
    %475 = arith.negf %474 : vector<8x128xf32>
    %476 = math.exp %475 : vector<8x128xf32>
    %cst_108 = arith.constant 1.000000e+00 : f32
    %477 = vector.broadcast %cst_108 : f32 to vector<8x128xf32>
    %478 = arith.addf %477, %476 : vector<8x128xf32>
    %479 = arith.divf %477, %478 : vector<8x128xf32>
    %480 = math.tanh %474 : vector<8x128xf32>
    %481 = vector.extract_strided_slice %479 {offsets = [0, 32], sizes = [8, 32], strides = [1, 1]} : vector<8x128xf32> to vector<8x32xf32>
    %482 = arith.mulf %481, %435 : vector<8x32xf32>
    %483 = vector.extract_strided_slice %479 {offsets = [0, 0], sizes = [8, 32], strides = [1, 1]} : vector<8x128xf32> to vector<8x32xf32>
    %484 = vector.extract_strided_slice %480 {offsets = [0, 64], sizes = [8, 32], strides = [1, 1]} : vector<8x128xf32> to vector<8x32xf32>
    %485 = arith.mulf %483, %484 : vector<8x32xf32>
    %486 = arith.addf %482, %485 : vector<8x32xf32>
    %487 = vector.extract_strided_slice %479 {offsets = [0, 96], sizes = [8, 32], strides = [1, 1]} : vector<8x128xf32> to vector<8x32xf32>
    %488 = math.tanh %486 : vector<8x32xf32>
    %489 = arith.mulf %487, %488 : vector<8x32xf32>
    %490 = arith.truncf %489 : vector<8x32xf32> to vector<8x32xbf16>
    %cst_109 = arith.constant dense<0.000000e+00> : vector<8x128xf32>
    %491 = tpu.matmul %490, %2, %cst_109 {dimension_numbers = #tpu.dot_dimension_numbers<[1], [0], [0], [1], [0, 0, 1, 1], [], []>} : vector<8x32xbf16>, vector<32x128xbf16>, vector<8x128xf32> -> vector<8x128xf32>
    %492 = arith.addf %491, %11 : vector<8x128xf32>
    %493 = arith.index_cast %c6_i32_106 : i32 to index
    %c0_110 = arith.constant 0 : index
    %c0_111 = arith.constant 0 : index
    %494 = vector.load %arg10[%493, %c0_110, %c0_111] : memref<8x8x128xf32, #tpu.memory_space<vmem>>, vector<1x8x128xf32>
    %495 = vector.shape_cast %494 : vector<1x8x128xf32> to vector<8x128xf32>
    %496 = vector.shape_cast %492 : vector<8x128xf32> to vector<1x8x128xf32>
    tpu.vector_store %arg10[%493, %c0_110, %c0_111], %496 {strides = array<i32>} : memref<8x8x128xf32, #tpu.memory_space<vmem>>, vector<1x8x128xf32>,
    %cst_112 = arith.constant dense<0xFF800000> : vector<8xf32>
    %497 = vector.multi_reduction <maximumf>, %492, %cst_112 [1] : vector<8x128xf32> to vector<8xf32>
    %498 = vector.shape_cast %497 : vector<8xf32> to vector<8x1xf32>
    %499 = vector.broadcast %498 : vector<8x1xf32> to vector<8x128xf32>
    %500 = arith.cmpf oeq, %492, %499 : vector<8x128xf32>
    %c128_i32_113 = arith.constant 128 : i32
    %501 = vector.broadcast %c128_i32_113 : i32 to vector<8x128xi32>
    %502 = arith.select %500, %13, %501 : vector<8x128xi1>, vector<8x128xi32>
    %cst_114 = arith.constant dense<2147483647> : vector<8xi32>
    %503 = vector.multi_reduction <minsi>, %502, %cst_114 [1] : vector<8x128xi32> to vector<8xi32>
    %504 = vector.shape_cast %503 : vector<8xi32> to vector<8x1xi32>
    %505 = vector.broadcast %504 : vector<8x1xi32> to vector<8x128xi32>
    %506 = arith.cmpi eq, %13, %505 : vector<8x128xi32>
    %507 = arith.extui %506 : vector<8x128xi1> to vector<8x128xi32>
    %508 = arith.sitofp %507 : vector<8x128xi32> to vector<8x128xf32>
    %509 = arith.truncf %508 : vector<8x128xf32> to vector<8x128xbf16>
    %510 = arith.index_cast %c6_i32_106 : i32 to index
    %c0_115 = arith.constant 0 : index
    %c0_116 = arith.constant 0 : index
    %511 = vector.load %arg3[%510, %c0_115, %c0_116] : memref<8x8x1xi32, #tpu.memory_space<vmem>>, vector<1x8x1xi32>
    %512 = vector.shape_cast %511 : vector<1x8x1xi32> to vector<8x1xi32>
    %513 = vector.broadcast %512 : vector<8x1xi32> to vector<8x128xi32>
    %514 = arith.cmpi eq, %13, %513 : vector<8x128xi32>
    %515 = arith.extui %514 : vector<8x128xi1> to vector<8x128xi32>
    %516 = arith.sitofp %515 : vector<8x128xi32> to vector<8x128xf32>
    %517 = arith.truncf %516 : vector<8x128xf32> to vector<8x128xbf16>
    %518 = arith.index_cast %c6_i32_106 : i32 to index
    %519 = memref.load %arg1[%518] : memref<8xi32, #tpu.memory_space<smem>>
    %c1_i32_117 = arith.constant 1 : i32
    %520 = arith.cmpi eq, %519, %c1_i32_117 : i32
    %521 = arith.select %520, %517, %509 : vector<8x128xbf16>
    %c7_i32_118 = arith.constant 7 : i32
    %522 = arith.truncf %489 : vector<8x32xf32> to vector<8x32xbf16>
    %523 = tpu.concatenate %521, %522 in 1 : vector<8x128xbf16>, vector<8x32xbf16> -> vector<8x160xbf16>
    %cst_119 = arith.constant dense<0.000000e+00> : vector<8x128xf32>
    %524 = tpu.matmul %523, %1, %cst_119 {dimension_numbers = #tpu.dot_dimension_numbers<[1], [0], [0], [1], [0, 0, 1, 1], [], []>} : vector<8x160xbf16>, vector<160x128xbf16>, vector<8x128xf32> -> vector<8x128xf32>
    %525 = arith.addf %524, %8 : vector<8x128xf32>
    %526 = arith.negf %525 : vector<8x128xf32>
    %527 = math.exp %526 : vector<8x128xf32>
    %cst_120 = arith.constant 1.000000e+00 : f32
    %528 = vector.broadcast %cst_120 : f32 to vector<8x128xf32>
    %529 = arith.addf %528, %527 : vector<8x128xf32>
    %530 = arith.divf %528, %529 : vector<8x128xf32>
    %531 = math.tanh %525 : vector<8x128xf32>
    %532 = vector.extract_strided_slice %530 {offsets = [0, 32], sizes = [8, 32], strides = [1, 1]} : vector<8x128xf32> to vector<8x32xf32>
    %533 = arith.mulf %532, %486 : vector<8x32xf32>
    %534 = vector.extract_strided_slice %530 {offsets = [0, 0], sizes = [8, 32], strides = [1, 1]} : vector<8x128xf32> to vector<8x32xf32>
    %535 = vector.extract_strided_slice %531 {offsets = [0, 64], sizes = [8, 32], strides = [1, 1]} : vector<8x128xf32> to vector<8x32xf32>
    %536 = arith.mulf %534, %535 : vector<8x32xf32>
    %537 = arith.addf %533, %536 : vector<8x32xf32>
    %538 = vector.extract_strided_slice %530 {offsets = [0, 96], sizes = [8, 32], strides = [1, 1]} : vector<8x128xf32> to vector<8x32xf32>
    %539 = math.tanh %537 : vector<8x32xf32>
    %540 = arith.mulf %538, %539 : vector<8x32xf32>
    %541 = arith.truncf %540 : vector<8x32xf32> to vector<8x32xbf16>
    %cst_121 = arith.constant dense<0.000000e+00> : vector<8x128xf32>
    %542 = tpu.matmul %541, %2, %cst_121 {dimension_numbers = #tpu.dot_dimension_numbers<[1], [0], [0], [1], [0, 0, 1, 1], [], []>} : vector<8x32xbf16>, vector<32x128xbf16>, vector<8x128xf32> -> vector<8x128xf32>
    %543 = arith.addf %542, %11 : vector<8x128xf32>
    %544 = arith.index_cast %c7_i32_118 : i32 to index
    %c0_122 = arith.constant 0 : index
    %c0_123 = arith.constant 0 : index
    %545 = vector.load %arg10[%544, %c0_122, %c0_123] : memref<8x8x128xf32, #tpu.memory_space<vmem>>, vector<1x8x128xf32>
    %546 = vector.shape_cast %545 : vector<1x8x128xf32> to vector<8x128xf32>
    %547 = vector.shape_cast %543 : vector<8x128xf32> to vector<1x8x128xf32>
    tpu.vector_store %arg10[%544, %c0_122, %c0_123], %547 {strides = array<i32>} : memref<8x8x128xf32, #tpu.memory_space<vmem>>, vector<1x8x128xf32>,
    %cst_124 = arith.constant dense<0xFF800000> : vector<8xf32>
    %548 = vector.multi_reduction <maximumf>, %543, %cst_124 [1] : vector<8x128xf32> to vector<8xf32>
    %549 = vector.shape_cast %548 : vector<8xf32> to vector<8x1xf32>
    %550 = vector.broadcast %549 : vector<8x1xf32> to vector<8x128xf32>
    %551 = arith.cmpf oeq, %543, %550 : vector<8x128xf32>
    %c128_i32_125 = arith.constant 128 : i32
    %552 = vector.broadcast %c128_i32_125 : i32 to vector<8x128xi32>
    %553 = arith.select %551, %13, %552 : vector<8x128xi1>, vector<8x128xi32>
    %cst_126 = arith.constant dense<2147483647> : vector<8xi32>
    %554 = vector.multi_reduction <minsi>, %553, %cst_126 [1] : vector<8x128xi32> to vector<8xi32>
    %555 = vector.shape_cast %554 : vector<8xi32> to vector<8x1xi32>
    %556 = vector.broadcast %555 : vector<8x1xi32> to vector<8x128xi32>
    %557 = arith.cmpi eq, %13, %556 : vector<8x128xi32>
    %558 = arith.extui %557 : vector<8x128xi1> to vector<8x128xi32>
    %559 = arith.sitofp %558 : vector<8x128xi32> to vector<8x128xf32>
    %560 = arith.truncf %559 : vector<8x128xf32> to vector<8x128xbf16>
    %561 = arith.index_cast %c7_i32_118 : i32 to index
    %c0_127 = arith.constant 0 : index
    %c0_128 = arith.constant 0 : index
    %562 = vector.load %arg3[%561, %c0_127, %c0_128] : memref<8x8x1xi32, #tpu.memory_space<vmem>>, vector<1x8x1xi32>
    %563 = vector.shape_cast %562 : vector<1x8x1xi32> to vector<8x1xi32>
    %564 = vector.broadcast %563 : vector<8x1xi32> to vector<8x128xi32>
    %565 = arith.cmpi eq, %13, %564 : vector<8x128xi32>
    %566 = arith.extui %565 : vector<8x128xi1> to vector<8x128xi32>
    %567 = arith.sitofp %566 : vector<8x128xi32> to vector<8x128xf32>
    %568 = arith.truncf %567 : vector<8x128xf32> to vector<8x128xbf16>
    %569 = arith.index_cast %c7_i32_118 : i32 to index
    %570 = memref.load %arg1[%569] : memref<8xi32, #tpu.memory_space<smem>>
    %c1_i32_129 = arith.constant 1 : i32
    %571 = arith.cmpi eq, %570, %c1_i32_129 : i32
    %572 = arith.select %571, %568, %560 : vector<8x128xbf16>
    %c7_i32_130 = arith.constant 7 : i32
    return
  }
  func.func @transform_0(%arg0: i32, %arg1: memref<8xi32, #tpu.memory_space<smem>>) -> (i32, i32, i32) {
    %c0_i32 = arith.constant 0 : i32
    %c0_i32_0 = arith.constant 0 : i32
    %c0_i32_1 = arith.constant 0 : i32
    %c0_i32_2 = arith.constant 0 : i32
    return %c0_i32, %c0_i32_0, %c0_i32_1 : i32, i32, i32
  }
  func.func @transform_1(%arg0: i32, %arg1: memref<8xi32, #tpu.memory_space<smem>>) -> (i32, i32, i32) {
    %c0_i32 = arith.constant 0 : i32
    %c0_i32_0 = arith.constant 0 : i32
    %c0_i32_1 = arith.constant 0 : i32
    %c0_i32_2 = arith.constant 0 : i32
    return %c0_i32, %c0_i32_0, %c0_i32_1 : i32, i32, i32
  }
  func.func @transform_2(%arg0: i32, %arg1: memref<8xi32, #tpu.memory_space<smem>>) -> (i32, i32) {
    %c0_i32 = arith.constant 0 : i32
    %c0_i32_0 = arith.constant 0 : i32
    %c0_i32_1 = arith.constant 0 : i32
    return %c0_i32, %c0_i32_0 : i32, i32
  }
  func.func @transform_3(%arg0: i32, %arg1: memref<8xi32, #tpu.memory_space<smem>>) -> (i32, i32) {
    %c0_i32 = arith.constant 0 : i32
    %c0_i32_0 = arith.constant 0 : i32
    %c0_i32_1 = arith.constant 0 : i32
    return %c0_i32, %c0_i32_0 : i32, i32
  }
  func.func @transform_4(%arg0: i32, %arg1: memref<8xi32, #tpu.memory_space<smem>>) -> (i32, i32) {
    %c0_i32 = arith.constant 0 : i32
    %c0_i32_0 = arith.constant 0 : i32
    %c0_i32_1 = arith.constant 0 : i32
    return %c0_i32, %c0_i32_0 : i32, i32
  }
  func.func @transform_5(%arg0: i32, %arg1: memref<8xi32, #tpu.memory_space<smem>>) -> (i32, i32) {
    %c0_i32 = arith.constant 0 : i32
    %c0_i32_0 = arith.constant 0 : i32
    %c0_i32_1 = arith.constant 0 : i32
    return %c0_i32, %c0_i32_0 : i32, i32
  }
  func.func @transform_6(%arg0: i32, %arg1: memref<8xi32, #tpu.memory_space<smem>>) -> (i32, i32) {
    %c0_i32 = arith.constant 0 : i32
    %c0_i32_0 = arith.constant 0 : i32
    %c0_i32_1 = arith.constant 0 : i32
    return %c0_i32, %c0_i32_0 : i32, i32
  }
  func.func @transform_7(%arg0: i32, %arg1: memref<8xi32, #tpu.memory_space<smem>>) -> (i32, i32) {
    %c0_i32 = arith.constant 0 : i32
    %c0_i32_0 = arith.constant 0 : i32
    %c0_i32_1 = arith.constant 0 : i32
    return %c0_i32, %c0_i32_0 : i32, i32
  }
  func.func @transform_8(%arg0: i32, %arg1: memref<8xi32, #tpu.memory_space<smem>>) -> (i32, i32, i32) {
    %c0_i32 = arith.constant 0 : i32
    %c0_i32_0 = arith.constant 0 : i32
    %c0_i32_1 = arith.constant 0 : i32
    %c0_i32_2 = arith.constant 0 : i32
    return %c0_i32, %c0_i32_0, %c0_i32_1 : i32, i32, i32
  }
}

</mosaic_0001>

<bundles_post_ra>
// kernel: _seq2seq_core.1
= control target key start
LH: loop header
LB: loop body
LE: loop exit
PB: predicated region body
PF: predicated region fallthrough
CT: control target
= control target key end

     0   :  { %s2023_s12 = smov [#allocation3]   ;;  %s2591_s0 = inlined_call_operand.vmem [shape: s32[8], index: 0, kind: input, shape index: {}]   ;;  %s2592_s1 = inlined_call_operand.vmem [shape: s32[7,8,1], index: 1, kind: input, shape index: {}]   ;;  %s2593_s2 = inlined_call_operand.vmem [shape: s32[8,8,1], index: 2, kind: input, shape index: {}]   ;;  %s2594_s3 = inlined_call_operand.vmem [shape: bf16[160,128], index: 3, kind: input, shape index: {}]   ;;  %s2595_s4 = inlined_call_operand.vmem [shape: f32[1,128], index: 4, kind: input, shape index: {}]   ;;  %s2596_s5 = inlined_call_operand.vmem [shape: bf16[160,128], index: 5, kind: input, shape index: {}]   ;;  %s2597_s6 = inlined_call_operand.vmem [shape: f32[1,128], index: 6, kind: input, shape index: {}]   ;;  %s2598_s7 = inlined_call_operand.vmem [shape: bf16[32,128], index: 7, kind: input, shape index: {}]   ;;  %s2599_s8 = inlined_call_operand.vmem [shape: f32[1,128], index: 8, kind: input, shape index: {}]   ;;  %s2600_s9 = inlined_call_operand.hbm [shape: f32[8,8,128], index: 9, kind: output, shape index: {}]  }
   0x1   :  { %s15_s11 = sshll.u32 %s2591_s0, 4  ;;  %s16_s11 = int_to_ptr.vmem [resolvable:$true] %s15_s11 }
   0x2   :  { %18 = dma.vmem_to_smem %s16_s11, 16, %s2023_s12, [#allocation2] }
   0x3   :  { %2019 = dma.done.wait [#allocation2], 16 }
   0x4   :  { %2020 = vsyncadd [#allocation2], 4294967280 }
   0x5   :  { %21 = sfence }
   0x6   :  { %v98_v0 = vld [vmem:[%s2592_s1] sm:$0xff]  ;;  %v2091_v1 = vld [vmem:[%s2594_s3 + $0x38] sm:$0xff]  ;;  %v2024_v2 = vmov 0   ;;  %v2097_v3 = vld [vmem:[%s2594_s3 + $0x30] sm:$0xff] }
   0x7   :  { %1863 = vset.pattern.permute.xlu0 %v2024_v2  ;;  %1864 = vset.pattern.permute.xlu2 %v2024_v2  ;;  %v2102_v4 = vld [vmem:[%s2594_s3 + $0x48] sm:$0xff]  ;;  %v2109_v5 = vld [vmem:[%s2594_s3 + $0x40] sm:$0xff] }
   0x8   :  { %100 = vperm.xlu0 %1863, %v98_v0   ;;  %170 = vmatpush.bf16.msra.mxu0 %v2091_v1 }
   0x9   :  { %251 = vmatpush.bf16.msra.mxu2 %v2091_v1  ;;  %1865 = vset.pattern.permute.xlu1 %v2024_v2 }
   0xa   :  { %189 = vmatpush.bf16.msra.mxu1 %v2102_v4  ;;  %270 = vmatpush.bf16.msra.mxu3 %v2102_v4 }
   0xb   :  { %22 = vsyncpa [#allocation5], 0  ;;  %v2116_v6 = vld [vmem:[%s2594_s3 + $0x28] sm:$0xff]  ;;  %v2127_v7 = vld [vmem:[%s2594_s3 + $0x20] sm:$0xff]  ;;  %v96_v12 = vlaneseq  ;;  %v2025_v15 = vmov 1.0|1.0  }
   0xc   :  { %171 = vmatpush.bf16.msra.mxu0 %v2097_v3  ;;  %v2136_v8 = vld [vmem:[%s2594_s3 + $0x18] sm:$0xff]  ;;  %v2144_v9 = vld [vmem:[%s2594_s3 + $0x10] sm:$0xff]  ;;  %v2152_v10 = vld [vmem:[%s2594_s3 + $0x8] sm:$0xff]  ;;  %s2026_s14 = smov 64   ;;  %vm166_vm8 = vcmask 261120   ;;  %s1793_s11 = sld [smem:[#allocation3 + $0x1]] }
   0xd   :  { %252 = vmatpush.bf16.msra.mxu2 %v2097_v3  ;;  %v2163_v11 = vld [vmem:[%s2594_s3] sm:$0xff]  ;;  %v2179_v13 = vand.u32 127, %v96_v12  ;;  %v1700_v39 = vld [vmem:[%s2592_s1 + $0x8] sm:$0xff]  ;;  %s1800_s15 = sld [smem:[#allocation3 + $0x2]] }
   0xe   :  { %190 = vmatpush.bf16.msra.mxu1 %v2109_v5  ;;  %271 = vmatpush.bf16.msra.mxu3 %v2109_v5  ;;  %v2195_v18 = vld [vmem:[%s2595_s4] ss:$0 sm:$0xff]  ;;  %s2027_s4 = smov 32   ;;  %s1807_s18 = sld [smem:[#allocation3 + $0x3]] }
   0xf   :  { %236 = vperm.xlu2 %1864, %v1700_v39   ;;  %s1814_s22 = sld [smem:[#allocation3 + $0x4]] }
  0x10   :  { %172 = vmatpush.bf16.msra.mxu0 %v2116_v6  ;;  %s1821_s25 = sld [smem:[#allocation3 + $0x5]] }
  0x11   :  { %191 = vmatmul.bf16.vlgmr.msra.gmra.mxu1 %v2024_v2  ;;  %253 = vmatpush.bf16.msra.mxu2 %v2116_v6  ;;  %s1828_s28 = sld [smem:[#allocation3 + $0x6]] }
  0x12   :  { %332 = vmatpush.bf16.msrb.mxu1 %v2091_v1  ;;  %351 = vmatpush.bf16.msrb.mxu3 %v2102_v4  ;;  %p928_p0 = scmp.eq.s32.totalorder %s1793_s11, 1 }
  0x13   :  { %p1052_p1 = scmp.eq.s32.totalorder %s1800_s15, 1 }
  0x14   :  { %173 = vmatpush.bf16.msra.mxu0 %v2127_v7  ;;  %s929_s12 = scalar_select %p928_p0, 1, 0 }
  0x15   :  { %254 = vmatpush.bf16.msra.mxu2 %v2127_v7  ;;  %s1053_s16 = scalar_select %p1052_p1, 1, 0 }
  0x16   :  { %333 = vmatpush.bf16.msrb.mxu1 %v2097_v3  ;;  %352 = vmatpush.bf16.msrb.mxu3 %v2109_v5  ;;  %p1176_p2 = scmp.eq.s32.totalorder %s1807_s18, 1  ;;  %p1300_p3 = scmp.eq.s32.totalorder %s1814_s22, 1 }
  0x17   :  { %p1424_p4 = scmp.eq.s32.totalorder %s1821_s25, 1  ;;  %p1548_p5 = scmp.eq.s32.totalorder %s1828_s28, 1 }
  0x18   :  { %174 = vmatpush.bf16.msra.mxu0 %v2136_v8  ;;  %s1177_s19 = scalar_select %p1176_p2, 1, 0 }
  0x19   :  { %255 = vmatpush.bf16.msra.mxu2 %v2136_v8  ;;  %s1301_s23 = scalar_select %p1300_p3, 1, 0 }
  0x1a   :  { %334 = vmatpush.bf16.msrb.mxu1 %v2116_v6 }
  0x1c   :  { %175 = vmatpush.bf16.msra.mxu0 %v2144_v9 }
  0x1d   :  { %256 = vmatpush.bf16.msra.mxu2 %v2144_v9 }
  0x1e   :  { %335 = vmatpush.bf16.msrb.mxu1 %v2127_v7 }
  0x20   :  { %176 = vmatpush.bf16.msra.mxu0 %v2152_v10 }
  0x21   :  { %257 = vmatpush.bf16.msra.mxu2 %v2152_v10 }
  0x22   :  { %336 = vmatpush.bf16.msrb.mxu1 %v2136_v8 }
  0x24   :  { %177 = vmatpush.bf16.msra.mxu0 %v2163_v11 }
  0x25   :  { %258 = vmatpush.bf16.msra.mxu2 %v2163_v11 }
  0x26   :  { %337 = vmatpush.bf16.msrb.mxu1 %v2144_v9 }
  0x28   :  { %432 = vmatpush.bf16.msrb.mxu0 %v2102_v4 }
  0x29   :  { %494 = vmatpush.bf16.msrb.mxu2 %v2091_v1 }
  0x2a   :  { %338 = vmatpush.bf16.msrb.mxu1 %v2152_v10 }
  0x2c   :  { %433 = vmatpush.bf16.msrb.mxu0 %v2109_v5 }
  0x2d   :  { %495 = vmatpush.bf16.msrb.mxu2 %v2097_v3 }
  0x2e   :  { %339 = vmatpush.bf16.msrb.mxu1 %v2163_v11 }
  0x31   :  { %496 = vmatpush.bf16.msrb.mxu2 %v2116_v6 }
  0x32   :  { %513 = vmatpush.bf16.msra.mxu1 %v2102_v4 }
  0x35   :  { %497 = vmatpush.bf16.msrb.mxu2 %v2127_v7 }
  0x36   :  { %514 = vmatpush.bf16.msra.mxu1 %v2109_v5 }
  0x39   :  { %498 = vmatpush.bf16.msrb.mxu2 %v2136_v8 }
  0x3d   :  { %499 = vmatpush.bf16.msrb.mxu2 %v2144_v9 }
  0x41   :  { %500 = vmatpush.bf16.msrb.mxu2 %v2152_v10 }
  0x45   :  { %501 = vmatpush.bf16.msrb.mxu2 %v2163_v11 }
  0x69   :  { %v237_v44 = vpop.permute.xlu2 %236 }
  0x6a   :  { %vm238_vm6 = vcmp.eq.s32.totalorder %v2179_v13, %v237_v44 }
  0x6b   :  { %vm1702_vm7 = vmpackc.low %vm238_vm6, %vm238_vm6 }
  0x6c   :  { %1703 = vmatmul.msk.bf16.vlgmr.msra.gmra.mxu2 %vm1702_vm7, %v2025_v15 }
  0x6d   :  { %675 = vmatpush.bf16.msra.mxu2 %v2102_v4 }
  0x71   :  { %676 = vmatpush.bf16.msra.mxu2 %v2109_v5 }
  0x7a   :  { %v101_v14 = vpop.permute.xlu0 %100 }
  0x7b   :  { %vm102_vm0 = vcmp.eq.s32.totalorder %v2179_v13, %v101_v14 }
  0x7c   :  { %vm1697_vm1 = vmpackc.low %vm102_vm0, %vm102_vm0 }
  0x7d   :  { %1698 = vmatmul.msk.bf16.vlgmr.msra.gmra.mxu0 %vm1697_vm1, %v2025_v15 }
  0x7e   :  { %575 = vmatpush.bf16.msra.mxu0 %v2091_v1 }
  0x82   :  { %576 = vmatpush.bf16.msra.mxu0 %v2097_v3 }
  0x86   :  { %577 = vmatpush.bf16.msra.mxu0 %v2116_v6 }
  0x8a   :  { %578 = vmatpush.bf16.msra.mxu0 %v2127_v7 }
  0x8e   :  { %v192_v16 = vpop.f32.mrf.mxu1  ;;  %579 = vmatpush.bf16.msra.mxu0 %v2136_v8 }
  0x92   :  { %580 = vmatpush.bf16.msra.mxu0 %v2144_v9 }
  0x96   :  { %v194_v17 = vpop.f32.mrf.mxu1  ;;  %581 = vmatpush.bf16.msra.mxu0 %v2152_v10 }
  0x9a   :  { %582 = vmatpush.bf16.msra.mxu0 %v2163_v11 }
  0xef   :  { %v260_v51 = vpop.f32.mrf.mxu2 }
  0xf0   :  { %v261_v53 = vadd.f32 %v2195_v18, %v260_v51 }
  0xf7   :  { %v262_v52 = vpop.f32.mrf.mxu2 }
  0xfa   :  { %v179_v19 = vpop.f32.mrf.mxu0 }
  0xfb   :  { %v180_v20 = vadd.f32 %v2195_v18, %v179_v19 }
  0xfd   :  { %v193_v21 = vadd.f32 %v192_v16, %v180_v20 }
  0xff   :  { %1869 = vtanh.f32 %v193_v21  ;;  %v1699_v24 = vmul.f32 -1.442695, %v193_v21 }
 0x101   :  { %1871 = vpow2.f32 %v1699_v24 }
 0x102   :  { %v181_v22 = vpop.f32.mrf.mxu0 }
 0x105   :  { %v1870_v23 = vpop.eup %1869 }
 0x106   :  { %218 = vrot.lane.b32.xlu0 %v1870_v23, %s2026_s14 }
 0x107   :  { %v1872_v25 = vpop.eup %1871 }
 0x108   :  { %v199_v26 = vadd.f32 1.0, %v1872_v25 }
 0x10a   :  { %1873 = vrcp.f32 %v199_v26  ;;  %v211_v32 = vand.u32 2147483648, %v199_v26  ;;  %vm205_vm3 = vweird.f32 %v199_v26  ;;  %v209_v33 = vand.u32 2147483647, %v199_v26 }
 0x10c   :  { %v212_v35 = vor.u32 1.1754944e-38, %v211_v32  ;;  %vm210_vm5 = vcmp.eq.f32.partialorder %v209_v33, 8.507059e+37 }
 0x110   :  { %v1874_v27 = vpop.eup %1873 }
 0x111   :  { %v201_v28 = vmul.f32 %v1874_v27, %v199_v26  ;;  %vm206_vm2 = vweird.f32 %v1874_v27  ;;  %v1706_v26 = vld [vmem:[%s2592_s1 + $0x10] sm:$0xff] }
 0x112   :  { %vm207_vm4 = vmor %vm205_vm3, %vm206_vm2 }
 0x113   :  { %v202_v29 = vsub.f32 1.0, %v201_v28 }
 0x115   :  { %v203_v30 = vmul.f32 %v1874_v27, %v202_v29 }
 0x117   :  { %v204_v31 = vadd.f32 %v1874_v27, %v203_v30 }
 0x119   :  { %v208_v34 = vsel %vm207_vm4, %v1874_v27, %v204_v31 }
 0x11a   :  { %v213_v37 = vsel %vm210_vm5, %v212_v35, %v208_v34 }
 0x11b   :  { %v216_v40 = vmul.f32 0.0, %v213_v37 }
 0x178   :  { %v219_v36 = vpop.permute.xlu0 %218 }
 0x179   :  { %v221_v38 = vmul.f32 %v219_v36, %v213_v37 }
 0x17b   :  { %223 = vrot.lane.b32.xlu1 %v221_v38, %s2027_s4 }
 0x1ed   :  { %v224_v41 = vpop.permute.xlu1 %223 }
 0x1ee   :  { %v226_v42 = vadd.f32 %v224_v41, %v216_v40 }
 0x1f0   :  { %1875 = vtanh.f32 %v226_v42 }
 0x1f6   :  { %v1876_v43 = vpop.eup %1875 }
 0x1f7   :  { %229 = vrot.lane.b32.xlu1 %v1876_v43, %s2026_s14 }
 0x269   :  { %v230_v45 = vpop.permute.xlu1 %229 }
 0x26a   :  { %v232_v46 = vmul.f32 %v230_v45, %v213_v37 }
 0x26c   :  { %v242_v47 = vpack.c.bf16 %v232_v46, %v232_v46 }
 0x26e   :  { %v244_v48 = vunpack.c.l.b16 %v242_v47 }
 0x270   :  { %v245_v49 = vpack.c.b16 %v244_v48, %v244_v48 }
 0x272   :  { %246 = vrot.lane.b32.xlu2 %v245_v49, %s2027_s4 }
 0x2cc   :  { %v247_v50 = vpop.permute.xlu2 %246 }
 0x2cd   :  { %1704 = vmatmul.msk.bf16.vlgmr.msra.gmra.mxu3 %vm166_vm8, %v247_v50 }
 0x2ce   :  { %413 = vmatpush.bf16.msra.mxu3 %v2091_v1 }
 0x2d2   :  { %414 = vmatpush.bf16.msra.mxu3 %v2097_v3 }
 0x2d6   :  { %415 = vmatpush.bf16.msra.mxu3 %v2116_v6 }
 0x2da   :  { %416 = vmatpush.bf16.msra.mxu3 %v2127_v7 }
 0x2de   :  { %417 = vmatpush.bf16.msra.mxu3 %v2136_v8 }
 0x2e2   :  { %418 = vmatpush.bf16.msra.mxu3 %v2144_v9 }
 0x2e6   :  { %419 = vmatpush.bf16.msra.mxu3 %v2152_v10 }
 0x2ea   :  { %420 = vmatpush.bf16.msra.mxu3 %v2163_v11 }
 0x350   :  { %v273_v54 = vpop.f32.mrf.mxu3 }
 0x351   :  { %v274_v55 = vadd.f32 %v273_v54, %v261_v53 }
 0x353   :  { %1877 = vtanh.f32 %v274_v55  ;;  %v1705_v58 = vmul.f32 -1.442695, %v274_v55 }
 0x355   :  { %1879 = vpow2.f32 %v1705_v58 }
 0x358   :  { %v275_v56 = vpop.f32.mrf.mxu3 }
 0x359   :  { %v1878_v57 = vpop.eup %1877 }
 0x35a   :  { %299 = vrot.lane.b32.xlu0 %v1878_v57, %s2026_s14 }
 0x35b   :  { %v1880_v59 = vpop.eup %1879 }
 0x35c   :  { %v280_v60 = vadd.f32 1.0, %v1880_v59 }
 0x35e   :  { %1881 = vrcp.f32 %v280_v60  ;;  %v292_v12 = vand.u32 2147483648, %v280_v60  ;;  %vm286_vm10 = vweird.f32 %v280_v60  ;;  %v290_v14 = vand.u32 2147483647, %v280_v60 }
 0x360   :  { %v293_v17 = vor.u32 1.1754944e-38, %v292_v12  ;;  %vm291_vm12 = vcmp.eq.f32.partialorder %v290_v14, 8.507059e+37 }
 0x364   :  { %v1882_v61 = vpop.eup %1881 }
 0x365   :  { %v282_v62 = vmul.f32 %v1882_v61, %v280_v60  ;;  %vm287_vm9 = vweird.f32 %v1882_v61 }
 0x366   :  { %vm288_vm11 = vmor %vm286_vm10, %vm287_vm9 }
 0x367   :  { %v283_v63 = vsub.f32 1.0, %v282_v62 }
 0x369   :  { %v284_v0 = vmul.f32 %v1882_v61, %v283_v63 }
 0x36b   :  { %v285_v2 = vadd.f32 %v1882_v61, %v284_v0 }
 0x36d   :  { %v289_v16 = vsel %vm288_vm11, %v1882_v61, %v285_v2  ;;  %v1718_v2 = vld [vmem:[%s2592_s1 + $0x20] sm:$0xff] }
 0x36e   :  { %v294_v20 = vsel %vm291_vm12, %v293_v17, %v289_v16 }
 0x36f   :  { %v297_v22 = vmul.f32 %v294_v20, %v226_v42 }
 0x3cc   :  { %v300_v19 = vpop.permute.xlu0 %299 }
 0x3cd   :  { %v302_v21 = vmul.f32 %v300_v19, %v294_v20 }
 0x3cf   :  { %304 = vrot.lane.b32.xlu1 %v302_v21, %s2027_s4 }
 0x3d7   :  { %317 = vperm.xlu1 %1865, %v1706_v26  }
 0x441   :  { %v305_v23 = vpop.permute.xlu1 %304 }
 0x442   :  { %v2221_v24 = vadd.f32 %v305_v23, %v297_v22 }
 0x444   :  { %1883 = vtanh.f32 %v2221_v24 }
 0x449   :  { %v318_v32 = vpop.permute.xlu1 %317 }
 0x44a   :  { %v1884_v25 = vpop.eup %1883  ;;  %vm319_vm13 = vcmp.eq.s32.totalorder %v2179_v13, %v318_v32 }
 0x44b   :  { %310 = vrot.lane.b32.xlu2 %v1884_v25, %s2026_s14  ;;  %vm1708_vm14 = vmpackc.low %vm319_vm13, %vm319_vm13 }
 0x44c   :  { %1709 = vmatmul.msk.bf16.vlgmr.msrb.gmra.mxu1 %vm1708_vm14, %v2025_v15 }
 0x44d   :  { %594 = vmatpush.bf16.msrb.mxu1 %v2102_v4 }
 0x451   :  { %595 = vmatpush.bf16.msrb.mxu1 %v2109_v5 }
 0x4a5   :  { %v311_v27 = vpop.permute.xlu2 %310 }
 0x4a6   :  { %v313_v28 = vmul.f32 %v311_v27, %v294_v20 }
 0x4a8   :  { %v323_v29 = vpack.c.bf16 %v313_v28, %v313_v28 }
 0x4aa   :  { %v325_v30 = vunpack.c.l.b16 %v323_v29 }
 0x4ac   :  { %v326_v31 = vpack.c.b16 %v325_v30, %v325_v30 }
 0x4ae   :  { %327 = vrot.lane.b32.xlu0 %v326_v31, %s2027_s4 }
 0x4c9   :  { %v341_v4 = vpop.f32.mrf.mxu1 }
 0x4ca   :  { %v342_v34 = vadd.f32 %v2195_v18, %v341_v4 }
 0x4d1   :  { %v343_v5 = vpop.f32.mrf.mxu1 }
 0x520   :  { %v328_v33 = vpop.permute.xlu0 %327 }
 0x521   :  { %1710 = vmatmul.msk.bf16.vlgmr.msrb.gmra.mxu3 %vm166_vm8, %v328_v33 }
 0x522   :  { %656 = vmatpush.bf16.msrb.mxu3 %v2091_v1 }
 0x526   :  { %657 = vmatpush.bf16.msrb.mxu3 %v2097_v3 }
 0x52a   :  { %658 = vmatpush.bf16.msrb.mxu3 %v2116_v6  ;;  %v1712_v6 = vld [vmem:[%s2592_s1 + $0x18] sm:$0xff] }
 0x52e   :  { %659 = vmatpush.bf16.msrb.mxu3 %v2127_v7 }
 0x532   :  { %660 = vmatpush.bf16.msrb.mxu3 %v2136_v8 }
 0x536   :  { %661 = vmatpush.bf16.msrb.mxu3 %v2144_v9 }
 0x53a   :  { %662 = vmatpush.bf16.msrb.mxu3 %v2152_v10 }
 0x53e   :  { %663 = vmatpush.bf16.msrb.mxu3 %v2163_v11 }
 0x5a4   :  { %v354_v35 = vpop.f32.mrf.mxu3 }
 0x5a5   :  { %v355_v1 = vadd.f32 %v354_v35, %v342_v34 }
 0x5a7   :  { %1885 = vtanh.f32 %v355_v1  ;;  %v1711_v7 = vmul.f32 -1.442695, %v355_v1 }
 0x5a9   :  { %1887 = vpow2.f32 %v1711_v7 }
 0x5ac   :  { %v356_v3 = vpop.f32.mrf.mxu3 }
 0x5ad   :  { %v1886_v36 = vpop.eup %1885 }
 0x5ae   :  { %380 = vrot.lane.b32.xlu2 %v1886_v36, %s2026_s14 }
 0x5af   :  { %v1888_v8 = vpop.eup %1887 }
 0x5b0   :  { %v361_v9 = vadd.f32 1.0, %v1888_v8 }
 0x5b2   :  { %1889 = vrcp.f32 %v361_v9  ;;  %v373_v40 = vand.u32 2147483648, %v361_v9  ;;  %vm367_vm0 = vweird.f32 %v361_v9  ;;  %v371_v41 = vand.u32 2147483647, %v361_v9 }
 0x5b4   :  { %v374_v43 = vor.u32 1.1754944e-38, %v373_v40  ;;  %vm372_vm2 = vcmp.eq.f32.partialorder %v371_v41, 8.507059e+37 }
 0x5b6   :  { %398 = vperm.xlu2 %1864, %v1712_v6  }
 0x5b8   :  { %v1890_v10 = vpop.eup %1889 }
 0x5b9   :  { %v363_v11 = vmul.f32 %v1890_v10, %v361_v9  ;;  %vm368_vm15 = vweird.f32 %v1890_v10 }
 0x5ba   :  { %vm369_vm1 = vmor %vm367_vm0, %vm368_vm15 }
 0x5bb   :  { %v364_v37 = vsub.f32 1.0, %v363_v11 }
 0x5bd   :  { %v365_v38 = vmul.f32 %v1890_v10, %v364_v37 }
 0x5bf   :  { %v366_v39 = vadd.f32 %v1890_v10, %v365_v38  ;;  %v1724_v38 = vld [vmem:[%s2592_s1 + $0x28] sm:$0xff] }
 0x5c1   :  { %v370_v42 = vsel %vm369_vm1, %v1890_v10, %v366_v39 }
 0x5c2   :  { %v375_v45 = vsel %vm372_vm2, %v374_v43, %v370_v42 }
 0x5c3   :  { %v378_v48 = vmul.f32 %v375_v45, %v2221_v24 }
 0x608   :  { %v381_v44 = vpop.permute.xlu2 %380 }
 0x609   :  { %v383_v46 = vmul.f32 %v381_v44, %v375_v45 }
 0x60b   :  { %385 = vrot.lane.b32.xlu0 %v383_v46, %s2027_s4 }
 0x610   :  { %v399_v47 = vpop.permute.xlu2 %398 }
 0x611   :  { %vm400_vm3 = vcmp.eq.s32.totalorder %v2179_v13, %v399_v47 }
 0x612   :  { %vm1714_vm4 = vmpackc.low %vm400_vm3, %vm400_vm3 }
 0x613   :  { %1715 = vmatmul.msk.bf16.vlgmr.msra.gmra.mxu3 %vm1714_vm4, %v2025_v15 }
 0x67d   :  { %v386_v49 = vpop.permute.xlu0 %385 }
 0x67e   :  { %v388_v50 = vadd.f32 %v386_v49, %v378_v48 }
 0x680   :  { %1891 = vtanh.f32 %v388_v50 }
 0x686   :  { %v1892_v51 = vpop.eup %1891 }
 0x687   :  { %391 = vrot.lane.b32.xlu1 %v1892_v51, %s2026_s14 }
 0x696   :  { %v422_v52 = vpop.f32.mrf.mxu3 }
 0x697   :  { %v423_v60 = vadd.f32 %v2195_v18, %v422_v52 }
 0x69e   :  { %v424_v53 = vpop.f32.mrf.mxu3 }
 0x6f9   :  { %v392_v54 = vpop.permute.xlu1 %391 }
 0x6fa   :  { %v394_v55 = vmul.f32 %v392_v54, %v375_v45 }
 0x6fc   :  { %v404_v56 = vpack.c.bf16 %v394_v55, %v394_v55 }
 0x6fe   :  { %v406_v57 = vunpack.c.l.b16 %v404_v56 }
 0x700   :  { %v407_v58 = vpack.c.b16 %v406_v57, %v406_v57 }
 0x702   :  { %408 = vrot.lane.b32.xlu0 %v407_v58, %s2027_s4 }
 0x774   :  { %v409_v59 = vpop.permute.xlu0 %408 }
 0x775   :  { %1716 = vmatmul.msk.bf16.vlgmr.msrb.gmra.mxu0 %vm166_vm8, %v409_v59 }
 0x7f2   :  { %v435_v61 = vpop.f32.mrf.mxu0 }
 0x7f3   :  { %v436_v62 = vadd.f32 %v435_v61, %v423_v60 }
 0x7f5   :  { %1893 = vtanh.f32 %v436_v62  ;;  %v1717_v12 = vmul.f32 -1.442695, %v436_v62 }
 0x7f7   :  { %1895 = vpow2.f32 %v1717_v12 }
 0x7fa   :  { %v437_v63 = vpop.f32.mrf.mxu0 }
 0x7fb   :  { %v1894_v0 = vpop.eup %1893 }
 0x7fc   :  { %461 = vrot.lane.b32.xlu1 %v1894_v0, %s2026_s14 }
 0x7fd   :  { %v1896_v14 = vpop.eup %1895 }
 0x7fe   :  { %v442_v16 = vadd.f32 1.0, %v1896_v14 }
 0x800   :  { %1897 = vrcp.f32 %v442_v16  ;;  %v454_v23 = vand.u32 2147483648, %v442_v16  ;;  %vm448_vm6 = vweird.f32 %v442_v16  ;;  %v452_v24 = vand.u32 2147483647, %v442_v16 }
 0x802   :  { %v455_v26 = vor.u32 1.1754944e-38, %v454_v23  ;;  %vm453_vm9 = vcmp.eq.f32.partialorder %v452_v24, 8.507059e+37 }
 0x804   :  { %479 = vperm.xlu1 %1865, %v1718_v2  }
 0x806   :  { %v1898_v17 = vpop.eup %1897 }
 0x807   :  { %v444_v19 = vmul.f32 %v1898_v17, %v442_v16  ;;  %vm449_vm5 = vweird.f32 %v1898_v17 }
 0x808   :  { %vm450_vm7 = vmor %vm448_vm6, %vm449_vm5 }
 0x809   :  { %v445_v20 = vsub.f32 1.0, %v444_v19 }
 0x80b   :  { %v446_v21 = vmul.f32 %v1898_v17, %v445_v20 }
 0x80d   :  { %v447_v22 = vadd.f32 %v1898_v17, %v446_v21  ;;  %v1730_v21 = vld [vmem:[%s2592_s1 + $0x30] sm:$0xff]  ;;  %s1425_s1 = scalar_select %p1424_p4, 1, 0 }
 0x80f   :  { %v451_v25 = vsel %vm450_vm7, %v1898_v17, %v447_v22 }
 0x810   :  { %v456_v28 = vsel %vm453_vm9, %v455_v26, %v451_v25 }
 0x811   :  { %v459_v31 = vmul.f32 %v456_v28, %v388_v50 }
 0x86e   :  { %v462_v27 = vpop.permute.xlu1 %461 }
 0x86f   :  { %v464_v29 = vmul.f32 %v462_v27, %v456_v28 }
 0x871   :  { %466 = vrot.lane.b32.xlu2 %v464_v29, %s2027_s4 }
 0x876   :  { %v480_v30 = vpop.permute.xlu1 %479 }
 0x877   :  { %vm481_vm10 = vcmp.eq.s32.totalorder %v2179_v13, %v480_v30 }
 0x878   :  { %vm1720_vm11 = vmpackc.low %vm481_vm10, %vm481_vm10 }
 0x879   :  { %1721 = vmatmul.msk.bf16.vlgmr.msrb.gmra.mxu2 %vm1720_vm11, %v2025_v15 }
 0x8cb   :  { %v467_v32 = vpop.permute.xlu2 %466 }
 0x8cc   :  { %v469_v33 = vadd.f32 %v467_v32, %v459_v31 }
 0x8ce   :  { %1899 = vtanh.f32 %v469_v33 }
 0x8d4   :  { %v1900_v4 = vpop.eup %1899 }
 0x8d5   :  { %472 = vrot.lane.b32.xlu0 %v1900_v4, %s2026_s14 }
 0x8fc   :  { %v503_v5 = vpop.f32.mrf.mxu2 }
 0x8fd   :  { %v504_v8 = vadd.f32 %v2195_v18, %v503_v5 }
 0x904   :  { %v505_v34 = vpop.f32.mrf.mxu2 }
 0x947   :  { %v473_v35 = vpop.permute.xlu0 %472 }
 0x948   :  { %v475_v1 = vmul.f32 %v473_v35, %v456_v28 }
 0x94a   :  { %v485_v3 = vpack.c.bf16 %v475_v1, %v475_v1 }
 0x94c   :  { %v487_v36 = vunpack.c.l.b16 %v485_v3 }
 0x94e   :  { %v488_v6 = vpack.c.b16 %v487_v36, %v487_v36 }
 0x950   :  { %489 = vrot.lane.b32.xlu2 %v488_v6, %s2027_s4 }
 0x9aa   :  { %v490_v7 = vpop.permute.xlu2 %489 }
 0x9ab   :  { %1722 = vmatmul.msk.bf16.vlgmr.msra.gmra.mxu1 %vm166_vm8, %v490_v7 }
 0xa28   :  { %v516_v9 = vpop.f32.mrf.mxu1 }
 0xa29   :  { %v517_v10 = vadd.f32 %v516_v9, %v504_v8 }
 0xa2b   :  { %1901 = vtanh.f32 %v517_v10  ;;  %v1723_v39 = vmul.f32 -1.442695, %v517_v10 }
 0xa2d   :  { %1903 = vpow2.f32 %v1723_v39 }
 0xa30   :  { %v518_v11 = vpop.f32.mrf.mxu1 }
 0xa31   :  { %v1902_v37 = vpop.eup %1901 }
 0xa32   :  { %542 = vrot.lane.b32.xlu0 %v1902_v37, %s2026_s14 }
 0xa33   :  { %v1904_v40 = vpop.eup %1903 }
 0xa34   :  { %v523_v41 = vadd.f32 1.0, %v1904_v40  ;;  %v2293_v40 = vld [vmem:[%s2596_s5 + $0x38] sm:$0xff] }
 0xa35   :  { %797 = vmatpush.bf16.msra.mxu1 %v2293_v40  ;;  %933 = vmatpush.bf16.msra.mxu3 %v2293_v40 }
 0xa36   :  { %1905 = vrcp.f32 %v523_v41  ;;  %v535_v47 = vand.u32 2147483648, %v523_v41  ;;  %vm529_vm13 = vweird.f32 %v523_v41  ;;  %v533_v48 = vand.u32 2147483647, %v523_v41 }
 0xa38   :  { %v536_v50 = vor.u32 1.1754944e-38, %v535_v47  ;;  %vm534_vm15 = vcmp.eq.f32.partialorder %v533_v48, 8.507059e+37  ;;  %v2328_v48 = vld [vmem:[%s2596_s5 + $0x10] sm:$0xff] }
 0xa3a   :  { %560 = vperm.xlu0 %1863, %v1724_v38  }
 0xa3c   :  { %v1906_v42 = vpop.eup %1905 }
 0xa3d   :  { %v525_v43 = vmul.f32 %v1906_v42, %v523_v41  ;;  %vm530_vm12 = vweird.f32 %v1906_v42  ;;  %v2299_v41 = vld [vmem:[%s2596_s5 + $0x30] sm:$0xff] }
 0xa3e   :  { %vm531_vm14 = vmor %vm529_vm13, %vm530_vm12  ;;  %798 = vmatpush.bf16.msra.mxu1 %v2299_v41  ;;  %934 = vmatpush.bf16.msra.mxu3 %v2299_v41 }
 0xa3f   :  { %v526_v44 = vsub.f32 1.0, %v525_v43  ;;  %v2313_v43 = vld [vmem:[%s2596_s5 + $0x20] sm:$0xff] }
 0xa41   :  { %v527_v45 = vmul.f32 %v1906_v42, %v526_v44 }
 0xa43   :  { %v528_v46 = vadd.f32 %v1906_v42, %v527_v45 }
 0xa45   :  { %v532_v49 = vsel %vm531_vm14, %v1906_v42, %v528_v46  ;;  %v2306_v42 = vld [vmem:[%s2596_s5 + $0x28] sm:$0xff]  ;;  %v2321_v46 = vld [vmem:[%s2596_s5 + $0x18] sm:$0xff] }
 0xa46   :  { %v537_v52 = vsel %vm534_vm15, %v536_v50, %v532_v49  ;;  %799 = vmatpush.bf16.msra.mxu1 %v2306_v42  ;;  %935 = vmatpush.bf16.msra.mxu3 %v2306_v42  ;;  %v720_v50 = vld [vmem:[%s2593_s2] sm:$0xff] }
 0xa47   :  { %v540_v55 = vmul.f32 %v537_v52, %v469_v33 }
 0xa4a   :  { %800 = vmatpush.bf16.msra.mxu1 %v2313_v43  ;;  %936 = vmatpush.bf16.msra.mxu3 %v2313_v43 }
 0xa4e   :  { %801 = vmatpush.bf16.msra.mxu1 %v2321_v46  ;;  %937 = vmatpush.bf16.msra.mxu3 %v2321_v46 }
 0xa52   :  { %802 = vmatpush.bf16.msra.mxu1 %v2328_v48  ;;  %938 = vmatpush.bf16.msra.mxu3 %v2328_v48 }
 0xaa4   :  { %v543_v51 = vpop.permute.xlu0 %542 }
 0xaa5   :  { %v545_v53 = vmul.f32 %v543_v51, %v537_v52 }
 0xaa7   :  { %547 = vrot.lane.b32.xlu1 %v545_v53, %s2027_s4 }
 0xaac   :  { %v561_v54 = vpop.permute.xlu0 %560 }
 0xaad   :  { %vm562_vm0 = vcmp.eq.s32.totalorder %v2179_v13, %v561_v54  ;;  %v2340_v54 = vld [vmem:[%s2596_s5 + $0x8] sm:$0xff] }
 0xaae   :  { %vm1726_vm1 = vmpackc.low %vm562_vm0, %vm562_vm0  ;;  %803 = vmatpush.bf16.msra.mxu1 %v2340_v54  ;;  %939 = vmatpush.bf16.msra.mxu3 %v2340_v54 }
 0xaaf   :  { %1727 = vmatmul.msk.bf16.vlgmr.msra.gmra.mxu0 %vm1726_vm1, %v2025_v15 }
 0xb19   :  { %v548_v56 = vpop.permute.xlu1 %547 }
 0xb1a   :  { %v550_v57 = vadd.f32 %v548_v56, %v540_v55  ;;  %v2346_v55 = vld [vmem:[%s2596_s5] sm:$0xff] }
 0xb1b   :  { %804 = vmatpush.bf16.msra.mxu1 %v2346_v55  ;;  %940 = vmatpush.bf16.msra.mxu3 %v2346_v55 }
 0xb1c   :  { %1907 = vtanh.f32 %v550_v57 }
 0xb22   :  { %v1908_v58 = vpop.eup %1907 }
 0xb23   :  { %553 = vrot.lane.b32.xlu2 %v1908_v58, %s2026_s14 }
 0xb2c   :  { %v584_v59 = vpop.f32.mrf.mxu0 }
 0xb2d   :  { %v585_v14 = vadd.f32 %v2195_v18, %v584_v59 }
 0xb34   :  { %v586_v60 = vpop.f32.mrf.mxu0 }
 0xb7d   :  { %v554_v61 = vpop.permute.xlu2 %553 }
 0xb7e   :  { %v556_v62 = vmul.f32 %v554_v61, %v537_v52 }
 0xb80   :  { %v566_v63 = vpack.c.bf16 %v556_v62, %v556_v62 }
 0xb82   :  { %v568_v0 = vunpack.c.l.b16 %v566_v63 }
 0xb84   :  { %v569_v2 = vpack.c.b16 %v568_v0, %v568_v0 }
 0xb86   :  { %570 = vrot.lane.b32.xlu1 %v569_v2, %s2027_s4 }
 0xbf8   :  { %v571_v12 = vpop.permute.xlu1 %570 }
 0xbf9   :  { %1728 = vmatmul.msk.bf16.vlgmr.msrb.gmra.mxu1 %vm166_vm8, %v571_v12 }
 0xbfa   :  { %1057 = vmatpush.bf16.msrb.mxu1 %v2293_v40 }
 0xbfe   :  { %1058 = vmatpush.bf16.msrb.mxu1 %v2299_v41 }
 0xc02   :  { %1059 = vmatpush.bf16.msrb.mxu1 %v2306_v42 }
 0xc06   :  { %1060 = vmatpush.bf16.msrb.mxu1 %v2313_v43 }
 0xc0a   :  { %1061 = vmatpush.bf16.msrb.mxu1 %v2321_v46 }
 0xc0e   :  { %1062 = vmatpush.bf16.msrb.mxu1 %v2328_v48 }
 0xc12   :  { %1063 = vmatpush.bf16.msrb.mxu1 %v2340_v54 }
 0xc16   :  { %1064 = vmatpush.bf16.msrb.mxu1 %v2346_v55 }
 0xc76   :  { %v597_v16 = vpop.f32.mrf.mxu1 }
 0xc77   :  { %v598_v17 = vadd.f32 %v597_v16, %v585_v14 }
 0xc79   :  { %1909 = vtanh.f32 %v598_v17  ;;  %v1729_v22 = vmul.f32 -1.442695, %v598_v17 }
 0xc7b   :  { %1911 = vpow2.f32 %v1729_v22 }
 0xc7e   :  { %v599_v19 = vpop.f32.mrf.mxu1 }
 0xc7f   :  { %v1910_v20 = vpop.eup %1909 }
 0xc80   :  { %623 = vrot.lane.b32.xlu2 %v1910_v20, %s2026_s14 }
 0xc81   :  { %v1912_v23 = vpop.eup %1911 }
 0xc82   :  { %v604_v24 = vadd.f32 1.0, %v1912_v23  ;;  %v2383_v23 = vld [vmem:[%s2596_s5 + $0x48] sm:$0xff] }
 0xc83   :  { %816 = vmatpush.bf16.msrb.mxu0 %v2383_v23 }
 0xc84   :  { %1913 = vrcp.f32 %v604_v24  ;;  %v616_v30 = vand.u32 2147483648, %v604_v24  ;;  %vm610_vm3 = vweird.f32 %v604_v24  ;;  %v614_v31 = vand.u32 2147483647, %v604_v24 }
 0xc86   :  { %v617_v33 = vor.u32 1.1754944e-38, %v616_v30  ;;  %vm615_vm5 = vcmp.eq.f32.partialorder %v614_v31, 8.507059e+37  ;;  %v2401_v31 = vld [vmem:[%s2597_s6] ss:$0 sm:$0xff] }
 0xc88   :  { %641 = vperm.xlu2 %1864, %v1730_v21  }
 0xc8a   :  { %v1914_v25 = vpop.eup %1913 }
 0xc8b   :  { %v606_v26 = vmul.f32 %v1914_v25, %v604_v24  ;;  %vm611_vm2 = vweird.f32 %v1914_v25  ;;  %v2389_v24 = vld [vmem:[%s2596_s5 + $0x40] sm:$0xff] }
 0xc8c   :  { %vm612_vm4 = vmor %vm610_vm3, %vm611_vm2  ;;  %817 = vmatpush.bf16.msrb.mxu0 %v2389_v24 }
 0xc8d   :  { %v607_v27 = vsub.f32 1.0, %v606_v26 }
 0xc8f   :  { %v608_v28 = vmul.f32 %v1914_v25, %v607_v27 }
 0xc90   :  { %952 = vmatpush.bf16.msra.mxu0 %v2383_v23 }
 0xc91   :  { %v609_v29 = vadd.f32 %v1914_v25, %v608_v28 }
 0xc93   :  { %v613_v32 = vsel %vm612_vm4, %v1914_v25, %v609_v29 }
 0xc94   :  { %v618_v5 = vsel %vm615_vm5, %v617_v33, %v613_v32  ;;  %953 = vmatpush.bf16.msra.mxu0 %v2389_v24 }
 0xc95   :  { %v621_v1 = vmul.f32 %v618_v5, %v550_v57 }
 0xcda   :  { %v624_v4 = vpop.permute.xlu2 %623 }
 0xcdb   :  { %v626_v34 = vmul.f32 %v624_v4, %v618_v5 }
 0xcdd   :  { %628 = vrot.lane.b32.xlu0 %v626_v34, %s2027_s4 }
 0xce2   :  { %v642_v35 = vpop.permute.xlu2 %641 }
 0xce3   :  { %vm643_vm6 = vcmp.eq.s32.totalorder %v2179_v13, %v642_v35 }
 0xce4   :  { %vm1732_vm7 = vmpackc.low %vm643_vm6, %vm643_vm6 }
 0xce5   :  { %1733 = vmatmul.msk.bf16.vlgmr.msrb.gmra.mxu3 %vm1732_vm7, %v2025_v15 }
 0xce6   :  { %1181 = vmatpush.bf16.msrb.mxu3 %v2293_v40 }
 0xcea   :  { %1182 = vmatpush.bf16.msrb.mxu3 %v2299_v41 }
 0xcee   :  { %1183 = vmatpush.bf16.msrb.mxu3 %v2306_v42 }
 0xcf2   :  { %1184 = vmatpush.bf16.msrb.mxu3 %v2313_v43 }
 0xcf6   :  { %1185 = vmatpush.bf16.msrb.mxu3 %v2321_v46 }
 0xcfa   :  { %1186 = vmatpush.bf16.msrb.mxu3 %v2328_v48 }
 0xcfe   :  { %1187 = vmatpush.bf16.msrb.mxu3 %v2340_v54 }
 0xd02   :  { %1188 = vmatpush.bf16.msrb.mxu3 %v2346_v55 }
 0xd4f   :  { %v629_v3 = vpop.permute.xlu0 %628 }
 0xd50   :  { %v2284_v36 = vadd.f32 %v629_v3, %v621_v1 }
 0xd52   :  { %1915 = vtanh.f32 %v2284_v36 }
 0xd58   :  { %v1916_v6 = vpop.eup %1915 }
 0xd59   :  { %634 = vrot.lane.b32.xlu1 %v1916_v6, %s2026_s14 }
 0xd68   :  { %v665_v7 = vpop.f32.mrf.mxu3 }
 0xd69   :  { %v666_v44 = vadd.f32 %v2195_v18, %v665_v7 }
 0xd70   :  { %v667_v8 = vpop.f32.mrf.mxu3 }
 0xdcb   :  { %v635_v9 = vpop.permute.xlu1 %634 }
 0xdcc   :  { %v637_v10 = vmul.f32 %v635_v9, %v618_v5 }
 0xdce   :  { %v647_v11 = vpack.c.bf16 %v637_v10, %v637_v10 }
 0xdd0   :  { %v649_v37 = vunpack.c.l.b16 %v647_v11 }
 0xdd2   :  { %v650_v38 = vpack.c.b16 %v649_v37, %v649_v37 }
 0xdd4   :  { %651 = vrot.lane.b32.xlu0 %v650_v38, %s2027_s4 }
 0xe46   :  { %v652_v39 = vpop.permute.xlu0 %651 }
 0xe47   :  { %1734 = vmatmul.msk.bf16.vlgmr.msra.gmra.mxu2 %vm166_vm8, %v652_v39 }
 0xeca   :  { %v678_v45 = vpop.f32.mrf.mxu2 }
 0xecb   :  { %v679_v47 = vadd.f32 %v678_v45, %v666_v44 }
 0xecd   :  { %1917 = vtanh.f32 %v679_v47  ;;  %v1735_v51 = vmul.f32 -1.442695, %v679_v47 }
 0xecf   :  { %1919 = vpow2.f32 %v1735_v51  ;;  %v2413_v51 = vld [vmem:[%s2598_s7 + $0x8] sm:$0xff] }
 0xed0   :  { %887 = vmatpush.bf16.msrb.mxu2 %v2413_v51 }
 0xed2   :  { %v680_v18 = vpop.f32.mrf.mxu2 }
 0xed3   :  { %v1918_v49 = vpop.eup %1917 }
 0xed4   :  { %704 = vrot.lane.b32.xlu1 %v1918_v49, %s2026_s14 }
 0xed5   :  { %v1920_v52 = vpop.eup %1919 }
 0xed6   :  { %v685_v53 = vadd.f32 1.0, %v1920_v52  ;;  %v2419_v52 = vld [vmem:[%s2598_s7] sm:$0xff]  ;;  %s1549_s7 = scalar_select %p1548_p5, 1, 0 }
 0xed7   :  { %888 = vmatpush.bf16.msrb.mxu2 %v2419_v52 }
 0xed8   :  { %1921 = vrcp.f32 %v685_v53  ;;  %v697_v61 = vand.u32 2147483648, %v685_v53  ;;  %vm691_vm10 = vweird.f32 %v685_v53  ;;  %v695_v62 = vand.u32 2147483647, %v685_v53 }
 0xeda   :  { %v698_v0 = vor.u32 1.1754944e-38, %v697_v61  ;;  %vm696_vm12 = vcmp.eq.f32.partialorder %v695_v62, 8.507059e+37  ;;  %v2434_v62 = vld [vmem:[%s2599_s8] ss:$0 sm:$0xff] }
 0xedb   :  { %1011 = vmatpush.bf16.msra.mxu2 %v2413_v51 }
 0xedc   :  { %722 = vperm.xlu1 %1865, %v720_v50  }
 0xede   :  { %v1922_v56 = vpop.eup %1921 }
 0xedf   :  { %v687_v57 = vmul.f32 %v1922_v56, %v685_v53  ;;  %vm692_vm9 = vweird.f32 %v1922_v56  ;;  %1012 = vmatpush.bf16.msra.mxu2 %v2419_v52 }
 0xee0   :  { %vm693_vm11 = vmor %vm691_vm10, %vm692_vm9 }
 0xee1   :  { %v688_v58 = vsub.f32 1.0, %v687_v57 }
 0xee3   :  { %v689_v59 = vmul.f32 %v1922_v56, %v688_v58 }
 0xee5   :  { %v690_v60 = vadd.f32 %v1922_v56, %v689_v59 }
 0xee7   :  { %v694_v63 = vsel %vm693_vm11, %v1922_v56, %v690_v60 }
 0xee8   :  { %v699_v12 = vsel %vm696_vm12, %v698_v0, %v694_v63 }
 0xee9   :  { %v702_v17 = vmul.f32 %v699_v12, %v2284_v36 }
 0xf46   :  { %v705_v2 = vpop.permute.xlu1 %704 }
 0xf47   :  { %v707_v14 = vmul.f32 %v705_v2, %v699_v12 }
 0xf49   :  { %709 = vrot.lane.b32.xlu2 %v707_v14, %s2027_s4 }
 0xf4e   :  { %v723_v16 = vpop.permute.xlu1 %722 }
 0xf4f   :  { %vm724_vm13 = vcmp.eq.s32.totalorder %v2179_v13, %v723_v16 }
 0xf50   :  { %vm1777_vm14 = vmpackc.low %vm724_vm13, %vm724_vm13 }
 0xf51   :  { %1778 = vmatmul.msk.bf16.vlgmr.msra.gmra.mxu1 %vm1777_vm14, %v2025_v15 }
 0xf52   :  { %1305 = vmatpush.bf16.msra.mxu1 %v2293_v40 }
 0xf56   :  { %1306 = vmatpush.bf16.msra.mxu1 %v2299_v41 }
 0xf5a   :  { %1307 = vmatpush.bf16.msra.mxu1 %v2306_v42 }
 0xf5e   :  { %1308 = vmatpush.bf16.msra.mxu1 %v2313_v43 }
 0xf62   :  { %1309 = vmatpush.bf16.msra.mxu1 %v2321_v46 }
 0xf66   :  { %1310 = vmatpush.bf16.msra.mxu1 %v2328_v48 }
 0xf6a   :  { %1311 = vmatpush.bf16.msra.mxu1 %v2340_v54 }
 0xf6e   :  { %1312 = vmatpush.bf16.msra.mxu1 %v2346_v55 }
 0xfa3   :  { %v710_v19 = vpop.permute.xlu2 %709 }
 0xfa4   :  { %v712_v15 = vadd.f32 %v710_v19, %v702_v17 }
 0xfa6   :  { %1923 = vtanh.f32 %v712_v15 }
 0xfac   :  { %v1924_v20 = vpop.eup %1923 }
 0xfad   :  { %715 = vrot.lane.b32.xlu0 %v1924_v20, %s2026_s14  ;;  %v2028_v20 = vmov 0.0  }
 0xfae   :  { %719 = vst [vmem:[#allocation4] sm:$0xff] %v2028_v20 }
 0xfce   :  { %v806_v21 = vpop.f32.mrf.mxu1 }
 0xfcf   :  { %v807_v32 = vadd.f32 %v2401_v31, %v806_v21 }
 0xfd6   :  { %v808_v22 = vpop.f32.mrf.mxu1 }
0x101f   :  { %v716_v25 = vpop.permute.xlu0 %715 }
0x1020   :  { %v718_v26 = vmul.f32 %v716_v25, %v699_v12 }
0x1022   :  { %v728_v27 = vpack.c.bf16 %v718_v26, %v718_v26 }
0x1024   :  { %v730_v28 = vunpack.c.l.b16 %v728_v27 }
0x1026   :  { %v731_v29 = vpack.c.b16 %v730_v28, %v730_v28 }
0x1028   :  { %732 = vrot.lane.b32.xlu2 %v731_v29, %s2027_s4 }
0x1082   :  { %v733_v30 = vpop.permute.xlu2 %732 }
0x1083   :  { %1779 = vmatmul.msk.bf16.vlgmr.msrb.gmra.mxu0 %vm166_vm8, %v733_v30 }
0x1084   :  { %1076 = vmatpush.bf16.msrb.mxu0 %v2383_v23 }
0x1088   :  { %1077 = vmatpush.bf16.msrb.mxu0 %v2389_v24 }
0x1100   :  { %v819_v33 = vpop.f32.mrf.mxu0 }
0x1101   :  { %v820_v4 = vadd.f32 %v819_v33, %v807_v32 }
0x1103   :  { %1925 = vtanh.f32 %v820_v4  ;;  %v1780_v35 = vmul.f32 -1.442695, %v820_v4  ;;  %v930_v4 = vstv %s929_s12  ;;  %s1644_s12 = sshll.u32 %s2600_s9, 4  ;;  %s1645_s12 = int_to_ptr.hbm [resolvable:$true] %s1644_s12 }
0x1104   :  { %vm931_vm7 = vcmp.eq.s32.totalorder %v930_v4, 1 }
0x1105   :  { %1927 = vpow2.f32 %v1780_v35 }
0x1108   :  { %v821_v5 = vpop.f32.mrf.mxu0 }
0x1109   :  { %v1926_v34 = vpop.eup %1925 }
0x110a   :  { %845 = vrot.lane.b32.xlu0 %v1926_v34, %s2026_s14 }
0x110b   :  { %v1928_v1 = vpop.eup %1927 }
0x110c   :  { %v826_v3 = vadd.f32 1.0, %v1928_v1 }
0x110e   :  { %1929 = vrcp.f32 %v826_v3  ;;  %v838_v10 = vand.u32 2147483648, %v826_v3  ;;  %vm832_vm0 = vweird.f32 %v826_v3  ;;  %v836_v11 = vand.u32 2147483647, %v826_v3 }
0x1110   :  { %v839_v38 = vor.u32 1.1754944e-38, %v838_v10  ;;  %vm837_vm2 = vcmp.eq.f32.partialorder %v836_v11, 8.507059e+37 }
0x1114   :  { %v1930_v36 = vpop.eup %1929 }
0x1115   :  { %v828_v6 = vmul.f32 %v1930_v36, %v826_v3  ;;  %vm833_vm15 = vweird.f32 %v1930_v36 }
0x1116   :  { %vm834_vm1 = vmor %vm832_vm0, %vm833_vm15 }
0x1117   :  { %v829_v7 = vsub.f32 1.0, %v828_v6 }
0x1119   :  { %v830_v8 = vmul.f32 %v1930_v36, %v829_v7 }
0x111b   :  { %v831_v9 = vadd.f32 %v1930_v36, %v830_v8 }
0x111d   :  { %v835_v37 = vsel %vm834_vm1, %v1930_v36, %v831_v9 }
0x111e   :  { %v840_v44 = vsel %vm837_vm2, %v839_v38, %v835_v37 }
0x111f   :  { %v843_v47 = vmul.f32 %v840_v44, %v712_v15  ;;  %v1791_v15 = vld [vmem:[%s2593_s2 + $0x8] sm:$0xff] }
0x117c   :  { %v846_v39 = vpop.permute.xlu0 %845 }
0x117d   :  { %v848_v45 = vmul.f32 %v846_v39, %v840_v44 }
0x117f   :  { %850 = vrot.lane.b32.xlu1 %v848_v45, %s2027_s4 }
0x11f1   :  { %v851_v18 = vpop.permute.xlu1 %850 }
0x11f2   :  { %v2406_v49 = vadd.f32 %v851_v18, %v843_v47 }
0x11f4   :  { %1931 = vtanh.f32 %v2406_v49 }
0x11fa   :  { %v1932_v50 = vpop.eup %1931 }
0x11fb   :  { %856 = vrot.lane.b32.xlu2 %v1932_v50, %s2026_s14 }
0x1255   :  { %v857_v53 = vpop.permute.xlu2 %856 }
0x1256   :  { %v859_v56 = vmul.f32 %v857_v53, %v840_v44 }
0x1258   :  { %v860_v57 = vpack.c.bf16 %v859_v56, %v859_v56 }
0x125a   :  { %v862_v58 = vunpack.c.l.b16 %v860_v57 }
0x125c   :  { %v863_v59 = vpack.c.b16 %v862_v58, %v862_v58 }
0x125e   :  { %864 = vrot.lane.b32.xlu0 %v863_v59, %s2027_s4 }
0x12d0   :  { %v865_v60 = vpop.permute.xlu0 %864 }
0x12d1   :  { %1789 = vmatmul.msk.bf16.vlgmr.msrb.gmra.mxu2 %vm166_vm8, %v865_v60  ;;  %1794 = vmatmul.msk.bf16.vlgmr.msra.gmra.mxu0 %vm166_vm8, %v865_v60 }
0x12d2   :  { %1135 = vmatpush.bf16.msrb.mxu2 %v2413_v51  ;;  %1200 = vmatpush.bf16.msra.mxu0 %v2383_v23 }
0x12d6   :  { %1136 = vmatpush.bf16.msrb.mxu2 %v2419_v52  ;;  %1201 = vmatpush.bf16.msra.mxu0 %v2389_v24 }
0x134e   :  { %v955_v61 = vpop.f32.mrf.mxu0 }
0x1354   :  { %v890_v63 = vpop.f32.mrf.mxu2 }
0x1355   :  { %v891_v0 = vadd.f32 %v2434_v62, %v890_v63 }
0x1356   :  { %v957_v2 = vpop.f32.mrf.mxu0 }
0x1357   :  { %895 = vst [vmem:[#allocation4 + $0x8] sm:$0xff] %v891_v0  ;;  %896 = vmax.xlane.f32.xlu1 %v891_v0 }
0x135c   :  { %v892_v12 = vpop.f32.mrf.mxu2 }
0x13ca   :  { %v897_v14 = vpop.xlane.xlu1 %896 }
0x13cb   :  { %vm898_vm3 = vcmp.eq.f32.partialorder %v891_v0, %v897_v14 }
0x13cc   :  { %v899_v16 = vsel %vm898_vm3, %v2179_v13, 128 }
0x13cd   :  { %v901_v17 = vshra.s32 %v899_v16, 16  ;;  %v900_v21 = vand.u32 65535, %v899_v16 }
0x13cf   :  { %v903_v19 = vcvt.s32.f32 %v901_v17  ;;  %v902_v25 = vcvt.s32.f32 %v900_v21 }
0x13d1   :  { %904 = vmin.xlane.f32.xlu2 %v903_v19 }
0x13e9   :  { %921 = vperm.xlu2 %1864, %v1791_v15  }
0x1444   :  { %v905_v22 = vpop.xlane.xlu2 %904 }
0x1445   :  { %vm906_vm4 = vcmp.eq.f32.partialorder %v903_v19, %v905_v22  ;;  %v911_v27 = vcvt.f32.s32 %v905_v22 }
0x1446   :  { %v907_v26 = vsel %vm906_vm4, %v902_v25, inf }
0x1447   :  { %908 = vmin.xlane.f32.xlu0 %v907_v26  ;;  %v912_v30 = vshll.u32 %v911_v27, 16  ;;  %v1798_v26 = vld [vmem:[%s2593_s2 + $0x10] sm:$0xff] }
0x144c   :  { %v922_v28 = vpop.permute.xlu2 %921 }
0x144d   :  { %vm923_vm5 = vcmp.eq.s32.totalorder %v2179_v13, %v922_v28 }
0x144e   :  { %v1792_v5 = vsel %vm923_vm5, 1.0, %v2028_v20 }
0x144f   :  { %v926_v35 = vpack.c.bf16 %v1792_v5, %v1792_v5 }
0x14ba   :  { %v909_v29 = vpop.xlane.xlu0 %908 }
0x14bb   :  { %v910_v32 = vcvt.f32.s32 %v909_v29 }
0x14bd   :  { %v913_v33 = vadd.s32 %v912_v30, %v910_v32 }
0x14bf   :  { %vm914_vm6 = vcmp.eq.s32.totalorder %v2179_v13, %v913_v33 }
0x14c0   :  { %v1790_v34 = vsel %vm914_vm6, 1.0, %v2028_v20 }
0x14c1   :  { %v917_v1 = vpack.c.bf16 %v1790_v34, %v1790_v34 }
0x14c3   :  { %v932_v3 = vsel %vm931_vm7, %v926_v35, %v917_v1 }
0x14c4   :  { %941 = vmatmul.bf16.vlgmr.msra.gmra.mxu3 %v932_v3 }
0x14c5   :  { %1429 = vmatpush.bf16.msra.mxu3 %v2293_v40 }
0x14c9   :  { %1430 = vmatpush.bf16.msra.mxu3 %v2299_v41 }
0x14cd   :  { %1431 = vmatpush.bf16.msra.mxu3 %v2306_v42 }
0x14d1   :  { %1432 = vmatpush.bf16.msra.mxu3 %v2313_v43 }
0x14d5   :  { %1433 = vmatpush.bf16.msra.mxu3 %v2321_v46 }
0x14d9   :  { %1434 = vmatpush.bf16.msra.mxu3 %v2328_v48 }
0x14dd   :  { %1435 = vmatpush.bf16.msra.mxu3 %v2340_v54 }
0x14e1   :  { %1436 = vmatpush.bf16.msra.mxu3 %v2346_v55 }
0x1547   :  { %v942_v36 = vpop.f32.mrf.mxu3 }
0x1548   :  { %v943_v6 = vadd.f32 %v2401_v31, %v942_v36 }
0x154a   :  { %v956_v7 = vadd.f32 %v955_v61, %v943_v6 }
0x154c   :  { %1933 = vtanh.f32 %v956_v7  ;;  %v1795_v10 = vmul.f32 -1.442695, %v956_v7  ;;  %v1054_v7 = vstv %s1053_s16 }
0x154d   :  { %vm1055_vm1 = vcmp.eq.s32.totalorder %v1054_v7, 1  ;;  %v1178_v7 = vstv %s1177_s19 }
0x154e   :  { %1935 = vpow2.f32 %v1795_v10 }
0x154f   :  { %v944_v8 = vpop.f32.mrf.mxu3 }
0x1552   :  { %v1934_v9 = vpop.eup %1933 }
0x1553   :  { %981 = vrot.lane.b32.xlu1 %v1934_v9, %s2026_s14 }
0x1554   :  { %v1936_v11 = vpop.eup %1935 }
0x1555   :  { %v962_v37 = vadd.f32 1.0, %v1936_v11 }
0x1557   :  { %1937 = vrcp.f32 %v962_v37  ;;  %v974_v18 = vand.u32 2147483648, %v962_v37  ;;  %vm968_vm10 = vweird.f32 %v962_v37  ;;  %v972_v50 = vand.u32 2147483647, %v962_v37 }
0x1559   :  { %v975_v56 = vor.u32 1.1754944e-38, %v974_v18  ;;  %vm973_vm12 = vcmp.eq.f32.partialorder %v972_v50, 8.507059e+37 }
0x155d   :  { %v1938_v38 = vpop.eup %1937 }
0x155e   :  { %v964_v39 = vmul.f32 %v1938_v38, %v962_v37  ;;  %vm969_vm9 = vweird.f32 %v1938_v38 }
0x155f   :  { %vm970_vm11 = vmor %vm968_vm10, %vm969_vm9 }
0x1560   :  { %v965_v44 = vsub.f32 1.0, %v964_v39 }
0x1562   :  { %v966_v45 = vmul.f32 %v1938_v38, %v965_v44 }
0x1564   :  { %v967_v47 = vadd.f32 %v1938_v38, %v966_v45 }
0x1566   :  { %v971_v53 = vsel %vm970_vm11, %v1938_v38, %v967_v47  ;;  %vm1179_vm11 = vcmp.eq.s32.totalorder %v1178_v7, 1 }
0x1567   :  { %v976_v58 = vsel %vm973_vm12, %v975_v56, %v971_v53 }
0x1568   :  { %v979_v60 = vmul.f32 %v976_v58, %v2406_v49 }
0x15c5   :  { %v982_v57 = vpop.permute.xlu1 %981 }
0x15c6   :  { %v984_v59 = vmul.f32 %v982_v57, %v976_v58 }
0x15c8   :  { %986 = vrot.lane.b32.xlu0 %v984_v59, %s2027_s4 }
0x163a   :  { %v987_v61 = vpop.permute.xlu0 %986 }
0x163b   :  { %v2458_v63 = vadd.f32 %v987_v61, %v979_v60 }
0x163d   :  { %1939 = vtanh.f32 %v2458_v63 }
0x1643   :  { %v1940_v0 = vpop.eup %1939 }
0x1644   :  { %992 = vrot.lane.b32.xlu2 %v1940_v0, %s2026_s14 }
0x169e   :  { %v993_v2 = vpop.permute.xlu2 %992 }
0x169f   :  { %v995_v12 = vmul.f32 %v993_v2, %v976_v58 }
0x16a1   :  { %v996_v14 = vpack.c.bf16 %v995_v12, %v995_v12 }
0x16a3   :  { %v998_v16 = vunpack.c.l.b16 %v996_v14 }
0x16a5   :  { %v999_v17 = vpack.c.b16 %v998_v16, %v998_v16 }
0x16a7   :  { %1000 = vrot.lane.b32.xlu1 %v999_v17, %s2027_s4 }
0x1719   :  { %v1001_v19 = vpop.permute.xlu1 %1000 }
0x171a   :  { %1796 = vmatmul.msk.bf16.vlgmr.msra.gmra.mxu2 %vm166_vm8, %v1001_v19  ;;  %1801 = vmatmul.msk.bf16.vlgmr.msrb.gmra.mxu0 %vm166_vm8, %v1001_v19 }
0x171b   :  { %1259 = vmatpush.bf16.msra.mxu2 %v2413_v51  ;;  %1324 = vmatpush.bf16.msrb.mxu0 %v2383_v23 }
0x171f   :  { %1260 = vmatpush.bf16.msra.mxu2 %v2419_v52  ;;  %1325 = vmatpush.bf16.msrb.mxu0 %v2389_v24 }
0x1797   :  { %v1079_v49 = vpop.f32.mrf.mxu0 }
0x179d   :  { %v1014_v15 = vpop.f32.mrf.mxu2 }
0x179e   :  { %v1015_v21 = vadd.f32 %v2434_v62, %v1014_v15 }
0x179f   :  { %v1081_v22 = vpop.f32.mrf.mxu0 }
0x17a0   :  { %1019 = vst [vmem:[#allocation4 + $0x10] sm:$0xff] %v1015_v21  ;;  %1020 = vmax.xlane.f32.xlu0 %v1015_v21 }
0x17a5   :  { %v1016_v25 = vpop.f32.mrf.mxu2 }
0x17b4   :  { %1045 = vperm.xlu0 %1863, %v1798_v26   ;;  %v1805_v26 = vld [vmem:[%s2593_s2 + $0x18] sm:$0xff] }
0x1813   :  { %v1021_v27 = vpop.xlane.xlu0 %1020 }
0x1814   :  { %vm1022_vm13 = vcmp.eq.f32.partialorder %v1015_v21, %v1021_v27 }
0x1815   :  { %v1023_v28 = vsel %vm1022_vm13, %v2179_v13, 128 }
0x1816   :  { %v1025_v29 = vshra.s32 %v1023_v28, 16  ;;  %v1024_v32 = vand.u32 65535, %v1023_v28 }
0x1818   :  { %v1027_v30 = vcvt.s32.f32 %v1025_v29  ;;  %v1026_v4 = vcvt.s32.f32 %v1024_v32 }
0x181a   :  { %1028 = vmin.xlane.f32.xlu2 %v1027_v30 }
0x1826   :  { %v1046_v35 = vpop.permute.xlu0 %1045 }
0x1827   :  { %vm1047_vm15 = vcmp.eq.s32.totalorder %v2179_v13, %v1046_v35 }
0x1828   :  { %v1799_v8 = vsel %vm1047_vm15, 1.0, %v2028_v20 }
0x1829   :  { %v1050_v10 = vpack.c.bf16 %v1799_v8, %v1799_v8 }
0x188d   :  { %v1029_v33 = vpop.xlane.xlu2 %1028 }
0x188e   :  { %vm1030_vm14 = vcmp.eq.f32.partialorder %v1027_v30, %v1029_v33  ;;  %v1035_v34 = vcvt.f32.s32 %v1029_v33 }
0x188f   :  { %v1031_v5 = vsel %vm1030_vm14, %v1026_v4, inf }
0x1890   :  { %1032 = vmin.xlane.f32.xlu1 %v1031_v5  ;;  %v1036_v3 = vshll.u32 %v1035_v34, 16 }
0x1903   :  { %v1033_v1 = vpop.xlane.xlu1 %1032 }
0x1904   :  { %v1034_v36 = vcvt.f32.s32 %v1033_v1 }
0x1906   :  { %v1037_v6 = vadd.s32 %v1036_v3, %v1034_v36 }
0x1908   :  { %vm1038_vm0 = vcmp.eq.s32.totalorder %v2179_v13, %v1037_v6 }
0x1909   :  { %v1797_v9 = vsel %vm1038_vm0, 1.0, %v2028_v20 }
0x190a   :  { %v1041_v11 = vpack.c.bf16 %v1797_v9, %v1797_v9 }
0x190c   :  { %v1056_v37 = vsel %vm1055_vm1, %v1050_v10, %v1041_v11 }
0x190d   :  { %1065 = vmatmul.bf16.vlgmr.msrb.gmra.mxu1 %v1056_v37 }
0x190e   :  { %1553 = vmatpush.bf16.msrb.mxu1 %v2293_v40 }
0x1912   :  { %1554 = vmatpush.bf16.msrb.mxu1 %v2299_v41 }
0x1916   :  { %1555 = vmatpush.bf16.msrb.mxu1 %v2306_v42 }
0x191a   :  { %1556 = vmatpush.bf16.msrb.mxu1 %v2313_v43 }
0x191e   :  { %1557 = vmatpush.bf16.msrb.mxu1 %v2321_v46 }
0x1922   :  { %1558 = vmatpush.bf16.msrb.mxu1 %v2328_v48 }
0x1926   :  { %1559 = vmatpush.bf16.msrb.mxu1 %v2340_v54 }
0x192a   :  { %1560 = vmatpush.bf16.msrb.mxu1 %v2346_v55 }
0x198a   :  { %v1066_v38 = vpop.f32.mrf.mxu1 }
0x198b   :  { %v1067_v39 = vadd.f32 %v2401_v31, %v1066_v38 }
0x198d   :  { %v1080_v44 = vadd.f32 %v1079_v49, %v1067_v39 }
0x198f   :  { %1941 = vtanh.f32 %v1080_v44  ;;  %v1802_v41 = vmul.f32 -1.442695, %v1080_v44 }
0x1991   :  { %1943 = vpow2.f32 %v1802_v41 }
0x1992   :  { %v1068_v40 = vpop.f32.mrf.mxu1 }
0x1995   :  { %v1942_v45 = vpop.eup %1941 }
0x1996   :  { %1105 = vrot.lane.b32.xlu2 %v1942_v45, %s2026_s14 }
0x1997   :  { %v1944_v42 = vpop.eup %1943 }
0x1998   :  { %v1086_v43 = vadd.f32 1.0, %v1944_v42 }
0x199a   :  { %1945 = vrcp.f32 %v1086_v43  ;;  %v1098_v55 = vand.u32 2147483648, %v1086_v43  ;;  %vm1092_vm3 = vweird.f32 %v1086_v43  ;;  %v1096_v50 = vand.u32 2147483647, %v1086_v43 }
0x199c   :  { %v1099_v56 = vor.u32 1.1754944e-38, %v1098_v55  ;;  %vm1097_vm5 = vcmp.eq.f32.partialorder %v1096_v50, 8.507059e+37 }
0x19a0   :  { %v1946_v46 = vpop.eup %1945 }
0x19a1   :  { %v1088_v48 = vmul.f32 %v1946_v46, %v1086_v43  ;;  %vm1093_vm2 = vweird.f32 %v1946_v46 }
0x19a2   :  { %vm1094_vm4 = vmor %vm1092_vm3, %vm1093_vm2 }
0x19a3   :  { %v1089_v47 = vsub.f32 1.0, %v1088_v48 }
0x19a5   :  { %v1090_v54 = vmul.f32 %v1946_v46, %v1089_v47 }
0x19a7   :  { %v1091_v18 = vadd.f32 %v1946_v46, %v1090_v54 }
0x19a9   :  { %v1095_v53 = vsel %vm1094_vm4, %v1946_v46, %v1091_v18 }
0x19aa   :  { %v1100_v58 = vsel %vm1097_vm5, %v1099_v56, %v1095_v53 }
0x19ab   :  { %v1103_v60 = vmul.f32 %v1100_v58, %v2458_v63 }
0x19f0   :  { %v1106_v57 = vpop.permute.xlu2 %1105 }
0x19f1   :  { %v1108_v59 = vmul.f32 %v1106_v57, %v1100_v58 }
0x19f3   :  { %1110 = vrot.lane.b32.xlu1 %v1108_v59, %s2027_s4 }
0x1a65   :  { %v1111_v61 = vpop.permute.xlu1 %1110 }
0x1a66   :  { %v2490_v0 = vadd.f32 %v1111_v61, %v1103_v60 }
0x1a68   :  { %1947 = vtanh.f32 %v2490_v0 }
0x1a6e   :  { %v1948_v2 = vpop.eup %1947 }
0x1a6f   :  { %1116 = vrot.lane.b32.xlu0 %v1948_v2, %s2026_s14 }
0x1ae1   :  { %v1117_v12 = vpop.permute.xlu0 %1116 }
0x1ae2   :  { %v1119_v14 = vmul.f32 %v1117_v12, %v1100_v58 }
0x1ae4   :  { %v1120_v16 = vpack.c.bf16 %v1119_v14, %v1119_v14 }
0x1ae6   :  { %v1122_v17 = vunpack.c.l.b16 %v1120_v16 }
0x1ae8   :  { %v1123_v19 = vpack.c.b16 %v1122_v17, %v1122_v17 }
0x1aea   :  { %1124 = vrot.lane.b32.xlu2 %v1123_v19, %s2027_s4 }
0x1b44   :  { %v1125_v49 = vpop.permute.xlu2 %1124 }
0x1b45   :  { %1803 = vmatmul.msk.bf16.vlgmr.msrb.gmra.mxu2 %vm166_vm8, %v1125_v49  ;;  %1808 = vmatmul.msk.bf16.vlgmr.msra.gmra.mxu0 %vm166_vm8, %v1125_v49 }
0x1b46   :  { %1383 = vmatpush.bf16.msrb.mxu2 %v2413_v51  ;;  %1448 = vmatpush.bf16.msra.mxu0 %v2383_v23 }
0x1b4a   :  { %1384 = vmatpush.bf16.msrb.mxu2 %v2419_v52  ;;  %1449 = vmatpush.bf16.msra.mxu0 %v2389_v24 }
0x1bc2   :  { %v1203_v63 = vpop.f32.mrf.mxu0 }
0x1bc8   :  { %v1138_v15 = vpop.f32.mrf.mxu2 }
0x1bc9   :  { %v1139_v21 = vadd.f32 %v2434_v62, %v1138_v15 }
0x1bca   :  { %v1205_v22 = vpop.f32.mrf.mxu0 }
0x1bcb   :  { %1143 = vst [vmem:[#allocation4 + $0x18] sm:$0xff] %v1139_v21  ;;  %1144 = vmax.xlane.f32.xlu0 %v1139_v21 }
0x1bd0   :  { %v1140_v25 = vpop.f32.mrf.mxu2 }
0x1bdf   :  { %1169 = vperm.xlu0 %1863, %v1805_v26   ;;  %v1812_v26 = vld [vmem:[%s2593_s2 + $0x20] sm:$0xff] }
0x1c3e   :  { %v1145_v27 = vpop.xlane.xlu0 %1144 }
0x1c3f   :  { %vm1146_vm6 = vcmp.eq.f32.partialorder %v1139_v21, %v1145_v27 }
0x1c40   :  { %v1147_v28 = vsel %vm1146_vm6, %v2179_v13, 128 }
0x1c41   :  { %v1149_v29 = vshra.s32 %v1147_v28, 16  ;;  %v1148_v32 = vand.u32 65535, %v1147_v28 }
0x1c43   :  { %v1151_v30 = vcvt.s32.f32 %v1149_v29  ;;  %v1150_v4 = vcvt.s32.f32 %v1148_v32 }
0x1c45   :  { %1152 = vmin.xlane.f32.xlu1 %v1151_v30 }
0x1c51   :  { %v1170_v35 = vpop.permute.xlu0 %1169 }
0x1c52   :  { %vm1171_vm9 = vcmp.eq.s32.totalorder %v2179_v13, %v1170_v35 }
0x1c53   :  { %v1806_v8 = vsel %vm1171_vm9, 1.0, %v2028_v20 }
0x1c54   :  { %v1174_v10 = vpack.c.bf16 %v1806_v8, %v1806_v8 }
0x1cb8   :  { %v1153_v33 = vpop.xlane.xlu1 %1152 }
0x1cb9   :  { %vm1154_vm7 = vcmp.eq.f32.partialorder %v1151_v30, %v1153_v33  ;;  %v1159_v34 = vcvt.f32.s32 %v1153_v33 }
0x1cba   :  { %v1155_v5 = vsel %vm1154_vm7, %v1150_v4, inf }
0x1cbb   :  { %1156 = vmin.xlane.f32.xlu2 %v1155_v5  ;;  %v1160_v3 = vshll.u32 %v1159_v34, 16 }
0x1d2e   :  { %v1157_v1 = vpop.xlane.xlu2 %1156 }
0x1d2f   :  { %v1158_v36 = vcvt.f32.s32 %v1157_v1 }
0x1d31   :  { %v1161_v6 = vadd.s32 %v1160_v3, %v1158_v36  ;;  %v1302_v36 = vstv %s1301_s23 }
0x1d32   :  { %vm1303_vm4 = vcmp.eq.s32.totalorder %v1302_v36, 1 }
0x1d33   :  { %vm1162_vm10 = vcmp.eq.s32.totalorder %v2179_v13, %v1161_v6 }
0x1d34   :  { %v1804_v9 = vsel %vm1162_vm10, 1.0, %v2028_v20 }
0x1d35   :  { %v1165_v11 = vpack.c.bf16 %v1804_v9, %v1804_v9 }
0x1d37   :  { %v1180_v37 = vsel %vm1179_vm11, %v1174_v10, %v1165_v11 }
0x1d38   :  { %1189 = vmatmul.bf16.vlgmr.msrb.gmra.mxu3 %v1180_v37 }
0x1dbb   :  { %v1190_v38 = vpop.f32.mrf.mxu3 }
0x1dbc   :  { %v1191_v39 = vadd.f32 %v2401_v31, %v1190_v38 }
0x1dbe   :  { %v1204_v44 = vadd.f32 %v1203_v63, %v1191_v39 }
0x1dc0   :  { %1949 = vtanh.f32 %v1204_v44  ;;  %v1809_v41 = vmul.f32 -1.442695, %v1204_v44 }
0x1dc2   :  { %1951 = vpow2.f32 %v1809_v41 }
0x1dc3   :  { %v1192_v40 = vpop.f32.mrf.mxu3 }
0x1dc6   :  { %v1950_v45 = vpop.eup %1949 }
0x1dc7   :  { %1229 = vrot.lane.b32.xlu1 %v1950_v45, %s2026_s14 }
0x1dc8   :  { %v1952_v42 = vpop.eup %1951 }
0x1dc9   :  { %v1210_v43 = vadd.f32 1.0, %v1952_v42 }
0x1dcb   :  { %1953 = vrcp.f32 %v1210_v43  ;;  %v1222_v55 = vand.u32 2147483648, %v1210_v43  ;;  %vm1216_vm13 = vweird.f32 %v1210_v43  ;;  %v1220_v50 = vand.u32 2147483647, %v1210_v43 }
0x1dcd   :  { %v1223_v56 = vor.u32 1.1754944e-38, %v1222_v55  ;;  %vm1221_vm15 = vcmp.eq.f32.partialorder %v1220_v50, 8.507059e+37 }
0x1dd1   :  { %v1954_v46 = vpop.eup %1953 }
0x1dd2   :  { %v1212_v48 = vmul.f32 %v1954_v46, %v1210_v43  ;;  %vm1217_vm12 = vweird.f32 %v1954_v46 }
0x1dd3   :  { %vm1218_vm14 = vmor %vm1216_vm13, %vm1217_vm12 }
0x1dd4   :  { %v1213_v47 = vsub.f32 1.0, %v1212_v48 }
0x1dd6   :  { %v1214_v54 = vmul.f32 %v1954_v46, %v1213_v47 }
0x1dd8   :  { %v1215_v18 = vadd.f32 %v1954_v46, %v1214_v54 }
0x1dda   :  { %v1219_v53 = vsel %vm1218_vm14, %v1954_v46, %v1215_v18 }
0x1ddb   :  { %v1224_v58 = vsel %vm1221_vm15, %v1223_v56, %v1219_v53 }
0x1ddc   :  { %v1227_v60 = vmul.f32 %v1224_v58, %v2490_v0 }
0x1e39   :  { %v1230_v57 = vpop.permute.xlu1 %1229 }
0x1e3a   :  { %v1232_v59 = vmul.f32 %v1230_v57, %v1224_v58 }
0x1e3c   :  { %1234 = vrot.lane.b32.xlu2 %v1232_v59, %s2027_s4 }
0x1e96   :  { %v1235_v61 = vpop.permute.xlu2 %1234 }
0x1e97   :  { %v2514_v2 = vadd.f32 %v1235_v61, %v1227_v60 }
0x1e99   :  { %1955 = vtanh.f32 %v2514_v2 }
0x1e9f   :  { %v1956_v12 = vpop.eup %1955 }
0x1ea0   :  { %1240 = vrot.lane.b32.xlu0 %v1956_v12, %s2026_s14 }
0x1f12   :  { %v1241_v14 = vpop.permute.xlu0 %1240 }
0x1f13   :  { %v1243_v16 = vmul.f32 %v1241_v14, %v1224_v58 }
0x1f15   :  { %v1244_v17 = vpack.c.bf16 %v1243_v16, %v1243_v16 }
0x1f17   :  { %v1246_v19 = vunpack.c.l.b16 %v1244_v17 }
0x1f19   :  { %v1247_v49 = vpack.c.b16 %v1246_v19, %v1246_v19 }
0x1f1b   :  { %1248 = vrot.lane.b32.xlu1 %v1247_v49, %s2027_s4 }
0x1f8d   :  { %v1249_v63 = vpop.permute.xlu1 %1248 }
0x1f8e   :  { %1810 = vmatmul.msk.bf16.vlgmr.msra.gmra.mxu2 %vm166_vm8, %v1249_v63  ;;  %1815 = vmatmul.msk.bf16.vlgmr.msrb.gmra.mxu0 %vm166_vm8, %v1249_v63 }
0x1f8f   :  { %1507 = vmatpush.bf16.msra.mxu2 %v2413_v51  ;;  %1572 = vmatpush.bf16.msrb.mxu0 %v2383_v23 }
0x1f93   :  { %1508 = vmatpush.bf16.msra.mxu2 %v2419_v52  ;;  %1573 = vmatpush.bf16.msrb.mxu0 %v2389_v24 }
0x200b   :  { %v1327_v0 = vpop.f32.mrf.mxu0 }
0x2011   :  { %v1262_v15 = vpop.f32.mrf.mxu2 }
0x2012   :  { %v1263_v21 = vadd.f32 %v2434_v62, %v1262_v15 }
0x2013   :  { %v1329_v22 = vpop.f32.mrf.mxu0 }
0x2014   :  { %1267 = vst [vmem:[#allocation4 + $0x20] sm:$0xff] %v1263_v21  ;;  %1268 = vmax.xlane.f32.xlu0 %v1263_v21  ;;  %v1819_v22 = vld [vmem:[%s2593_s2 + $0x28] sm:$0xff] }
0x2019   :  { %v1264_v25 = vpop.f32.mrf.mxu2 }
0x2028   :  { %1293 = vperm.xlu0 %1863, %v1812_v26  }
0x2087   :  { %v1269_v27 = vpop.xlane.xlu0 %1268 }
0x2088   :  { %vm1270_vm0 = vcmp.eq.f32.partialorder %v1263_v21, %v1269_v27 }
0x2089   :  { %v1271_v23 = vsel %vm1270_vm0, %v2179_v13, 128 }
0x208a   :  { %v1273_v28 = vshra.s32 %v1271_v23, 16  ;;  %v1272_v24 = vand.u32 65535, %v1271_v23 }
0x208c   :  { %v1275_v29 = vcvt.s32.f32 %v1273_v28  ;;  %v1274_v32 = vcvt.s32.f32 %v1272_v24 }
0x208e   :  { %1276 = vmin.xlane.f32.xlu2 %v1275_v29 }
0x209a   :  { %v1294_v5 = vpop.permute.xlu0 %1293 }
0x209b   :  { %vm1295_vm2 = vcmp.eq.s32.totalorder %v2179_v13, %v1294_v5 }
0x209c   :  { %v1813_v6 = vsel %vm1295_vm2, 1.0, %v2028_v20 }
0x209d   :  { %v1298_v8 = vpack.c.bf16 %v1813_v6, %v1813_v6 }
0x2101   :  { %v1277_v30 = vpop.xlane.xlu2 %1276 }
0x2102   :  { %vm1278_vm1 = vcmp.eq.f32.partialorder %v1275_v29, %v1277_v30  ;;  %v1283_v4 = vcvt.f32.s32 %v1277_v30 }
0x2103   :  { %v1279_v33 = vsel %vm1278_vm1, %v1274_v32, inf }
0x2104   :  { %1280 = vmin.xlane.f32.xlu1 %v1279_v33  ;;  %v1284_v35 = vshll.u32 %v1283_v4, 16 }
0x2177   :  { %v1281_v34 = vpop.xlane.xlu1 %1280 }
0x2178   :  { %v1282_v1 = vcvt.f32.s32 %v1281_v34  ;;  %v1426_v34 = vstv %s1425_s1 }
0x2179   :  { %vm1427_vm14 = vcmp.eq.s32.totalorder %v1426_v34, 1 }
0x217a   :  { %v1285_v3 = vadd.s32 %v1284_v35, %v1282_v1 }
0x217c   :  { %vm1286_vm3 = vcmp.eq.s32.totalorder %v2179_v13, %v1285_v3 }
0x217d   :  { %v1811_v7 = vsel %vm1286_vm3, 1.0, %v2028_v20 }
0x217e   :  { %v1289_v9 = vpack.c.bf16 %v1811_v7, %v1811_v7 }
0x2180   :  { %v1304_v10 = vsel %vm1303_vm4, %v1298_v8, %v1289_v9 }
0x2181   :  { %1313 = vmatmul.bf16.vlgmr.msra.gmra.mxu1 %v1304_v10 }
0x21fe   :  { %v1314_v11 = vpop.f32.mrf.mxu1 }
0x21ff   :  { %v1315_v37 = vadd.f32 %v2401_v31, %v1314_v11 }
0x2201   :  { %v1328_v38 = vadd.f32 %v1327_v0, %v1315_v37 }
0x2203   :  { %1957 = vtanh.f32 %v1328_v38  ;;  %v1816_v40 = vmul.f32 -1.442695, %v1328_v38 }
0x2205   :  { %1959 = vpow2.f32 %v1816_v40 }
0x2206   :  { %v1316_v39 = vpop.f32.mrf.mxu1 }
0x2209   :  { %v1958_v44 = vpop.eup %1957 }
0x220a   :  { %1353 = vrot.lane.b32.xlu2 %v1958_v44, %s2026_s14 }
0x220b   :  { %v1960_v45 = vpop.eup %1959 }
0x220c   :  { %v1334_v41 = vadd.f32 1.0, %v1960_v45 }
0x220e   :  { %1961 = vrcp.f32 %v1334_v41  ;;  %v1346_v54 = vand.u32 2147483648, %v1334_v41  ;;  %vm1340_vm6 = vweird.f32 %v1334_v41  ;;  %v1344_v18 = vand.u32 2147483647, %v1334_v41 }
0x2210   :  { %v1347_v50 = vor.u32 1.1754944e-38, %v1346_v54  ;;  %vm1345_vm9 = vcmp.eq.f32.partialorder %v1344_v18, 8.507059e+37 }
0x2214   :  { %v1962_v42 = vpop.eup %1961 }
0x2215   :  { %v1336_v43 = vmul.f32 %v1962_v42, %v1334_v41  ;;  %vm1341_vm5 = vweird.f32 %v1962_v42 }
0x2216   :  { %vm1342_vm7 = vmor %vm1340_vm6, %vm1341_vm5 }
0x2217   :  { %v1337_v46 = vsub.f32 1.0, %v1336_v43 }
0x2219   :  { %v1338_v48 = vmul.f32 %v1962_v42, %v1337_v46 }
0x221b   :  { %v1339_v47 = vadd.f32 %v1962_v42, %v1338_v48 }
0x221d   :  { %v1343_v55 = vsel %vm1342_vm7, %v1962_v42, %v1339_v47 }
0x221e   :  { %v1348_v56 = vsel %vm1345_vm9, %v1347_v50, %v1343_v55 }
0x221f   :  { %v1351_v58 = vmul.f32 %v1348_v56, %v2514_v2 }
0x2264   :  { %v1354_v53 = vpop.permute.xlu2 %1353 }
0x2265   :  { %v1356_v57 = vmul.f32 %v1354_v53, %v1348_v56 }
0x2267   :  { %1358 = vrot.lane.b32.xlu1 %v1356_v57, %s2027_s4 }
0x22d9   :  { %v1359_v59 = vpop.permute.xlu1 %1358 }
0x22da   :  { %v2538_v60 = vadd.f32 %v1359_v59, %v1351_v58 }
0x22dc   :  { %1963 = vtanh.f32 %v2538_v60 }
0x22e2   :  { %v1964_v61 = vpop.eup %1963 }
0x22e3   :  { %1364 = vrot.lane.b32.xlu0 %v1964_v61, %s2026_s14 }
0x2355   :  { %v1365_v12 = vpop.permute.xlu0 %1364 }
0x2356   :  { %v1367_v14 = vmul.f32 %v1365_v12, %v1348_v56 }
0x2358   :  { %v1368_v16 = vpack.c.bf16 %v1367_v14, %v1367_v14 }
0x235a   :  { %v1370_v17 = vunpack.c.l.b16 %v1368_v16 }
0x235c   :  { %v1371_v19 = vpack.c.b16 %v1370_v17, %v1370_v17 }
0x235e   :  { %1372 = vrot.lane.b32.xlu2 %v1371_v19, %s2027_s4 }
0x23b8   :  { %v1373_v49 = vpop.permute.xlu2 %1372 }
0x23b9   :  { %1817 = vmatmul.msk.bf16.vlgmr.msrb.gmra.mxu2 %vm166_vm8, %v1373_v49  ;;  %1822 = vmatmul.msk.bf16.vlgmr.msra.gmra.mxu0 %vm166_vm8, %v1373_v49 }
0x23ba   :  { %1629 = vmatpush.bf16.msrb.mxu2 %v2413_v51 }
0x23be   :  { %1630 = vmatpush.bf16.msrb.mxu2 %v2419_v52 }
0x2436   :  { %v1451_v2 = vpop.f32.mrf.mxu0 }
0x243c   :  { %v1386_v63 = vpop.f32.mrf.mxu2 }
0x243d   :  { %v1387_v0 = vadd.f32 %v2434_v62, %v1386_v63 }
0x243e   :  { %v1453_v15 = vpop.f32.mrf.mxu0 }
0x243f   :  { %1391 = vst [vmem:[#allocation4 + $0x28] sm:$0xff] %v1387_v0  ;;  %1392 = vmax.xlane.f32.xlu0 %v1387_v0 }
0x2444   :  { %v1388_v21 = vpop.f32.mrf.mxu2 }
0x2453   :  { %1417 = vperm.xlu0 %1863, %v1819_v22  }
0x24b2   :  { %v1393_v25 = vpop.xlane.xlu0 %1392 }
0x24b3   :  { %vm1394_vm10 = vcmp.eq.f32.partialorder %v1387_v0, %v1393_v25 }
0x24b4   :  { %v1395_v26 = vsel %vm1394_vm10, %v2179_v13, 128 }
0x24b5   :  { %v1397_v51 = vshra.s32 %v1395_v26, 16  ;;  %v1396_v52 = vand.u32 65535, %v1395_v26 }
0x24b7   :  { %v1399_v27 = vcvt.s32.f32 %v1397_v51  ;;  %v1398_v28 = vcvt.s32.f32 %v1396_v52 }
0x24b9   :  { %1400 = vmin.xlane.f32.xlu1 %v1399_v27 }
0x24c5   :  { %v1418_v30 = vpop.permute.xlu0 %1417 }
0x24c6   :  { %vm1419_vm12 = vcmp.eq.s32.totalorder %v2179_v13, %v1418_v30 }
0x24c7   :  { %v1820_v35 = vsel %vm1419_vm12, 1.0, %v2028_v20 }
0x24c8   :  { %v1422_v3 = vpack.c.bf16 %v1820_v35, %v1820_v35  ;;  %v1981_v35 = vld [vmem:[%s2597_s6] ss:$0 sm:$0xff]  ;;  %s2029_s6 = smov [#allocation4]  }
0x24c9   :  { %s1642_s30 = sshll.u32 %s2029_s6, 4  ;;  %s1643_s30 = int_to_ptr.vmem [resolvable:$true] %s1642_s30 }
0x252c   :  { %v1401_v23 = vpop.xlane.xlu1 %1400 }
0x252d   :  { %vm1402_vm11 = vcmp.eq.f32.partialorder %v1399_v27, %v1401_v23  ;;  %v1407_v24 = vcvt.f32.s32 %v1401_v23 }
0x252e   :  { %v1403_v29 = vsel %vm1402_vm11, %v1398_v28, inf }
0x252f   :  { %1404 = vmin.xlane.f32.xlu2 %v1403_v29  ;;  %v1408_v33 = vshll.u32 %v1407_v24, 16  ;;  %v1550_v24 = vstv %s1549_s7 }
0x2530   :  { %vm1551_vm7 = vcmp.eq.s32.totalorder %v1550_v24, 1 }
0x25a2   :  { %v1405_v32 = vpop.xlane.xlu2 %1404 }
0x25a3   :  { %v1406_v4 = vcvt.f32.s32 %v1405_v32 }
0x25a5   :  { %v1409_v5 = vadd.s32 %v1408_v33, %v1406_v4 }
0x25a7   :  { %vm1410_vm13 = vcmp.eq.s32.totalorder %v2179_v13, %v1409_v5 }
0x25a8   :  { %v1818_v1 = vsel %vm1410_vm13, 1.0, %v2028_v20 }
0x25a9   :  { %v1413_v36 = vpack.c.bf16 %v1818_v1, %v1818_v1 }
0x25ab   :  { %v1428_v6 = vsel %vm1427_vm14, %v1422_v3, %v1413_v36 }
0x25ac   :  { %1437 = vmatmul.bf16.vlgmr.msra.gmra.mxu3 %v1428_v6 }
0x262f   :  { %v1438_v7 = vpop.f32.mrf.mxu3 }
0x2630   :  { %v1439_v8 = vadd.f32 %v2401_v31, %v1438_v7 }
0x2632   :  { %v1452_v9 = vadd.f32 %v1451_v2, %v1439_v8  ;;  %v1826_v2 = vld [vmem:[%s2593_s2 + $0x30] sm:$0xff] }
0x2634   :  { %1965 = vtanh.f32 %v1452_v9  ;;  %v1823_v37 = vmul.f32 -1.442695, %v1452_v9 }
0x2636   :  { %1967 = vpow2.f32 %v1823_v37 }
0x2637   :  { %v1440_v10 = vpop.f32.mrf.mxu3 }
0x263a   :  { %v1966_v11 = vpop.eup %1965 }
0x263b   :  { %1477 = vrot.lane.b32.xlu2 %v1966_v11, %s2026_s14 }
0x263c   :  { %v1968_v38 = vpop.eup %1967 }
0x263d   :  { %v1458_v39 = vadd.f32 1.0, %v1968_v38 }
0x263f   :  { %1969 = vrcp.f32 %v1458_v39  ;;  %v1470_v43 = vand.u32 2147483648, %v1458_v39  ;;  %vm1464_vm0 = vweird.f32 %v1458_v39  ;;  %v1468_v31 = vand.u32 2147483647, %v1458_v39 }
0x2641   :  { %v1471_v48 = vor.u32 1.1754944e-38, %v1470_v43  ;;  %vm1469_vm2 = vcmp.eq.f32.partialorder %v1468_v31, 8.507059e+37 }
0x2645   :  { %v1970_v44 = vpop.eup %1969 }
0x2646   :  { %v1460_v40 = vmul.f32 %v1970_v44, %v1458_v39  ;;  %vm1465_vm15 = vweird.f32 %v1970_v44 }
0x2647   :  { %vm1466_vm1 = vmor %vm1464_vm0, %vm1465_vm15 }
0x2648   :  { %v1461_v45 = vsub.f32 1.0, %v1460_v40 }
0x264a   :  { %v1462_v41 = vmul.f32 %v1970_v44, %v1461_v45 }
0x264c   :  { %v1463_v42 = vadd.f32 %v1970_v44, %v1462_v41 }
0x264e   :  { %v1467_v46 = vsel %vm1466_vm1, %v1970_v44, %v1463_v42 }
0x264f   :  { %v1472_v54 = vsel %vm1469_vm2, %v1471_v48, %v1467_v46 }
0x2650   :  { %v1475_v55 = vmul.f32 %v1472_v54, %v2538_v60 }
0x2695   :  { %v1478_v47 = vpop.permute.xlu2 %1477 }
0x2696   :  { %v1480_v18 = vmul.f32 %v1478_v47, %v1472_v54 }
0x2698   :  { %1482 = vrot.lane.b32.xlu1 %v1480_v18, %s2027_s4 }
0x270a   :  { %v1483_v50 = vpop.permute.xlu1 %1482 }
0x270b   :  { %v2560_v53 = vadd.f32 %v1483_v50, %v1475_v55 }
0x270d   :  { %1971 = vtanh.f32 %v2560_v53 }
0x2713   :  { %v1972_v56 = vpop.eup %1971 }
0x2714   :  { %1488 = vrot.lane.b32.xlu0 %v1972_v56, %s2026_s14 }
0x2786   :  { %v1489_v57 = vpop.permute.xlu0 %1488 }
0x2787   :  { %v1491_v58 = vmul.f32 %v1489_v57, %v1472_v54 }
0x2789   :  { %v1492_v59 = vpack.c.bf16 %v1491_v58, %v1491_v58 }
0x278b   :  { %v1494_v61 = vunpack.c.l.b16 %v1492_v59 }
0x278d   :  { %v1495_v12 = vpack.c.b16 %v1494_v61, %v1494_v61 }
0x278f   :  { %1496 = vrot.lane.b32.xlu2 %v1495_v12, %s2027_s4 }
0x27e9   :  { %v1497_v14 = vpop.permute.xlu2 %1496 }
0x27ea   :  { %1824 = vmatmul.msk.bf16.vlgmr.msra.gmra.mxu2 %vm166_vm8, %v1497_v14  ;;  %1829 = vmatmul.msk.bf16.vlgmr.msrb.gmra.mxu0 %vm166_vm8, %v1497_v14 }
0x2867   :  { %v1575_v60 = vpop.f32.mrf.mxu0 }
0x286d   :  { %v1510_v16 = vpop.f32.mrf.mxu2 }
0x286e   :  { %v1511_v17 = vadd.f32 %v2434_v62, %v1510_v16 }
0x286f   :  { %v1577_v19 = vpop.f32.mrf.mxu0 }
0x2870   :  { %1515 = vst [vmem:[#allocation4 + $0x30] sm:$0xff] %v1511_v17  ;;  %1516 = vmax.xlane.f32.xlu0 %v1511_v17 }
0x2875   :  { %v1512_v49 = vpop.f32.mrf.mxu2 }
0x2884   :  { %1541 = vperm.xlu0 %1863, %v1826_v2  }
0x28e3   :  { %v1517_v63 = vpop.xlane.xlu0 %1516 }
0x28e4   :  { %vm1518_vm3 = vcmp.eq.f32.partialorder %v1511_v17, %v1517_v63 }
0x28e5   :  { %v1519_v0 = vsel %vm1518_vm3, %v2179_v13, 128 }
0x28e6   :  { %v1521_v15 = vshra.s32 %v1519_v0, 16  ;;  %v1520_v22 = vand.u32 65535, %v1519_v0 }
0x28e8   :  { %v1523_v21 = vcvt.s32.f32 %v1521_v15  ;;  %v1522_v26 = vcvt.s32.f32 %v1520_v22 }
0x28ea   :  { %1524 = vmin.xlane.f32.xlu1 %v1523_v21 }
0x28f6   :  { %v1542_v27 = vpop.permute.xlu0 %1541 }
0x28f7   :  { %vm1543_vm5 = vcmp.eq.s32.totalorder %v2179_v13, %v1542_v27 }
0x28f8   :  { %v1827_v30 = vsel %vm1543_vm5, 1.0, %v2028_v20 }
0x28f9   :  { %v1546_v33 = vpack.c.bf16 %v1827_v30, %v1827_v30 }
0x295d   :  { %v1525_v25 = vpop.xlane.xlu1 %1524 }
0x295e   :  { %vm1526_vm4 = vcmp.eq.f32.partialorder %v1523_v21, %v1525_v25  ;;  %v1531_v51 = vcvt.f32.s32 %v1525_v25 }
0x295f   :  { %v1527_v62 = vsel %vm1526_vm4, %v1522_v26, inf }
0x2960   :  { %1528 = vmin.xlane.f32.xlu2 %v1527_v62  ;;  %v1532_v23 = vshll.u32 %v1531_v51, 16 }
0x29d3   :  { %v1529_v52 = vpop.xlane.xlu2 %1528 }
0x29d4   :  { %v1530_v28 = vcvt.f32.s32 %v1529_v52 }
0x29d6   :  { %v1533_v29 = vadd.s32 %v1532_v23, %v1530_v28 }
0x29d8   :  { %vm1534_vm6 = vcmp.eq.s32.totalorder %v2179_v13, %v1533_v29 }
0x29d9   :  { %v1825_v32 = vsel %vm1534_vm6, 1.0, %v2028_v20 }
0x29da   :  { %v1537_v4 = vpack.c.bf16 %v1825_v32, %v1825_v32 }
0x29dc   :  { %v1552_v5 = vsel %vm1551_vm7, %v1546_v33, %v1537_v4 }
0x29dd   :  { %1561 = vmatmul.bf16.vlgmr.msrb.gmra.mxu1 %v1552_v5 }
0x2a5a   :  { %v1562_v34 = vpop.f32.mrf.mxu1 }
0x2a5b   :  { %v1563_v1 = vadd.f32 %v1981_v35, %v1562_v34 }
0x2a5d   :  { %v1576_v3 = vadd.f32 %v1575_v60, %v1563_v1 }
0x2a5f   :  { %1973 = vtanh.f32 %v1576_v3  ;;  %v1830_v13 = vmul.f32 -1.442695, %v1576_v3 }
0x2a61   :  { %1975 = vpow2.f32 %v1830_v13 }
0x2a62   :  { %v1564_v36 = vpop.f32.mrf.mxu1 }
0x2a65   :  { %v1974_v6 = vpop.eup %1973 }
0x2a66   :  { %1601 = vrot.lane.b32.xlu1 %v1974_v6, %s2026_s14 }
0x2a67   :  { %v1976_v20 = vpop.eup %1975 }
0x2a68   :  { %v1582_v7 = vadd.f32 1.0, %v1976_v20 }
0x2a6a   :  { %1977 = vrcp.f32 %v1582_v7  ;;  %v1594_v38 = vand.u32 2147483648, %v1582_v7  ;;  %vm1588_vm10 = vweird.f32 %v1582_v7  ;;  %v1592_v39 = vand.u32 2147483647, %v1582_v7 }
0x2a6c   :  { %v1595_v40 = vor.u32 1.1754944e-38, %v1594_v38  ;;  %vm1593_vm12 = vcmp.eq.f32.partialorder %v1592_v39, 8.507059e+37 }
0x2a70   :  { %v1978_v8 = vpop.eup %1977 }
0x2a71   :  { %v1584_v9 = vmul.f32 %v1978_v8, %v1582_v7  ;;  %vm1589_vm9 = vweird.f32 %v1978_v8 }
0x2a72   :  { %vm1590_vm11 = vmor %vm1588_vm10, %vm1589_vm9 }
0x2a73   :  { %v1585_v10 = vsub.f32 1.0, %v1584_v9 }
0x2a75   :  { %v1586_v11 = vmul.f32 %v1978_v8, %v1585_v10 }
0x2a77   :  { %v1587_v37 = vadd.f32 %v1978_v8, %v1586_v11 }
0x2a79   :  { %v1591_v44 = vsel %vm1590_vm11, %v1978_v8, %v1587_v37 }
0x2a7a   :  { %v1596_v41 = vsel %vm1593_vm12, %v1595_v40, %v1591_v44 }
0x2a7b   :  { %v1599_v43 = vmul.f32 %v1596_v41, %v2560_v53  ;;  %v1982_v53 = vld [vmem:[%s2599_s8] ss:$0 sm:$0xff] }
0x2ad8   :  { %v1602_v45 = vpop.permute.xlu1 %1601 }
0x2ad9   :  { %v1604_v42 = vmul.f32 %v1602_v45, %v1596_v41 }
0x2adb   :  { %1606 = vrot.lane.b32.xlu2 %v1604_v42, %s2027_s4 }
0x2b35   :  { %v1607_v31 = vpop.permute.xlu2 %1606 }
0x2b36   :  { %v1609_v46 = vadd.f32 %v1607_v31, %v1599_v43 }
0x2b38   :  { %1979 = vtanh.f32 %v1609_v46 }
0x2b3e   :  { %v1980_v48 = vpop.eup %1979 }
0x2b3f   :  { %1612 = vrot.lane.b32.xlu0 %v1980_v48, %s2026_s14  ;;  %s2030_s14 = smov 128  }
0x2bb1   :  { %v1613_v47 = vpop.permute.xlu0 %1612 }
0x2bb2   :  { %v1615_v54 = vmul.f32 %v1613_v47, %v1596_v41 }
0x2bb4   :  { %v1616_v18 = vpack.c.bf16 %v1615_v54, %v1615_v54 }
0x2bb6   :  { %1618 = vrot.lane.b32.xlu1 %v1616_v18, %s2027_s4  ;;  %s2031_s4 = smov 8  }
0x2c28   :  { %v1619_v55 = vpop.permute.xlu1 %1618 }
0x2c29   :  { %1831 = vmatmul.msk.bf16.vlgmr.msrb.gmra.mxu2 %vm166_vm8, %v1619_v55 }
0x2cac   :  { %v1632_v50 = vpop.f32.mrf.mxu2 }
0x2cad   :  { %v1633_v56 = vadd.f32 %v1982_v53, %v1632_v50 }
0x2caf   :  { %1637 = vst [vmem:[#allocation4 + $0x38] sm:$0xff] %v1633_v56 }
0x2cb0   :  { %1650 = dma.vmem_to_hbm [thread:$0]  %s1643_s30, 1024, %s1645_s12, [#allocation5], %s2030_s14, %s2030_s14, %s2031_s4  }
0x2cb4   :  { %v1634_v57 = vpop.f32.mrf.mxu2 }
0x2cb5   :  { %2021 = dma.done.wait [#allocation5], 1024  }
0x2cb6   :  { %2022 = vsyncadd [#allocation5], 4294966272 }
0x2cb7   :  { %1655 = vsyncpa [#allocation5], 1 }

</bundles_post_ra>
